<compile_context>
chip_gen: v5e
topology: v5e:2x2
jax: 0.10.0
libtpu: 0.0.40
codegen_flags: <defaults>
</compile_context>

<pallas_src>
import jax
import jax.numpy as jnp
from jax.experimental import pallas as pl
from jax.experimental.pallas import tpu as pltpu


def fused_lstm_kernel(x_ref, h0_ref, c0_ref, wx_ref, wh_ref, b_ref,
                      h_out_ref, c_out_ref):
    """Runs the whole T-step MyLSTM recurrence in a single invocation."""
    T = x_ref.shape[0]
    hdim = h_out_ref.shape[-1]
    hp = jax.lax.Precision.HIGHEST          # full-accuracy f32 MXU passes

    # All-timestep input projection + bias: (T, Din) @ (Din, 4H) -> (T, 4H).
    pre_x = jnp.dot(x_ref[...], wx_ref[...],
                    preferred_element_type=jnp.float32, precision=hp) + b_ref[...]

    h = h0_ref[...]          # (1, H) carried hidden state (lives in vregs)
    c = c0_ref[...]          # (1, H) carried (normalised) cell state

    h_rows = []
    c_rows = []
    for t in range(T):       # statically unrolled recurrence
        # Recurrent projection: (1, H) @ (H, 4H); packed gate order [i|f|o|c].
        pre = pre_x[t:t + 1, :] + jnp.dot(
            h, wh_ref[...], preferred_element_type=jnp.float32, precision=hp)
        gates = jax.nn.sigmoid(pre)          # module sigmoids ALL four gates

        f_g = gates[:, 1 * hdim:2 * hdim]
        o_g = gates[:, 2 * hdim:3 * hdim]
        # NOTE: the i / c gates only feed the scalar torch.dot(i, c), which is
        # added uniformly to every cell entry and cancelled exactly by the
        # mean subtraction below -> it never affects the module's outputs or
        # its carried (normalised) cell state, so it is omitted here.

        # cell = f * c_prev (+ const);  normalise: (x - mean) / (std_ddof1 + 1e-5)
        fc = f_g * c
        mean = jnp.sum(fc, keepdims=True) * (1.0 / hdim)
        d = fc - mean
        var = jnp.sum(d * d, keepdims=True) * (1.0 / (hdim - 1))
        std = jnp.sqrt(var)                  # keep (std + eps): module semantics
        c = d * pl.reciprocal(std + 1e-5, approx=False)
        h = o_g * jnp.tanh(c)

        h_rows.append(h)
        c_rows.append(c)

    # Single dense writeback of the whole sequence.
    h_out_ref[...] = jnp.concatenate(h_rows, axis=0)
    c_out_ref[...] = jnp.concatenate(c_rows, axis=0)


def lstm_sequence(xs, h0, c0, wx, wh, b):
    """Run T LSTM steps in one pallas_call. Returns (hs, cs), each (T, H)."""
    T, _ = xs.shape
    hdim = h0.shape[-1]
    vmem = pl.BlockSpec(memory_space=pltpu.MemorySpace.VMEM)
    hs, cs = pl.pallas_call(
        fused_lstm_kernel,
        out_shape=(jax.ShapeDtypeStruct((T, hdim), jnp.float32),
                   jax.ShapeDtypeStruct((T, hdim), jnp.float32)),
        in_specs=[vmem, vmem, vmem, vmem, vmem, vmem],
        out_specs=(vmem, vmem),
    )(xs, h0, c0, wx, wh, b)
    return hs, cs


def lstm_sequence_ref(xs, h0, c0, wx, wh, b):
    """Pure-JAX f32 reference mirroring MyLSTM._forward called per time step.

    Uses the same (mathematically identical) cancelled normalisation as the
    kernel: (c_new - mean(c_new)) == (f*c_prev - mean(f*c_prev)) exactly, and
    the stds are equal -- this is well conditioned in f32 and matches the
    module's float64 behaviour, whereas the literal f32 form is dominated by
    1e5-amplified rounding noise whenever f*c_prev is (near-)constant.
    """
    hdim = h0.shape[-1]
    hp = jax.lax.Precision.HIGHEST
    pre_x = jnp.dot(xs, wx, precision=hp) + b
    h, c = h0, c0
    hs, cs = [], []
    for t in range(xs.shape[0]):
        pre = pre_x[t:t + 1, :] + jnp.dot(h, wh, precision=hp)
        g = jax.nn.sigmoid(pre)
        f_g = g[:, 1 * hdim:2 * hdim]
        o_g = g[:, 2 * hdim:3 * hdim]
        fc = f_g * c
        mean = jnp.sum(fc, keepdims=True) * (1.0 / hdim)
        d = fc - mean
        var = jnp.sum(d * d, keepdims=True) * (1.0 / (hdim - 1))
        c = d / (jnp.sqrt(var) + 1e-5)
        h = o_g * jnp.tanh(c)
        hs.append(h)
        cs.append(c)
    return jnp.concatenate(hs, axis=0), jnp.concatenate(cs, axis=0)


if __name__ == "__main__":
    input_dem, hs_dem, seq_len = 16, 32, 8
    key = jax.random.PRNGKey(0)
    ks = jax.random.split(key, 11)

    # Parameters: randn * 0.01, biases zero (as in MyLSTM.__init__).
    w_xi = jax.random.normal(ks[0], (input_dem, hs_dem), jnp.float32) * 0.01
    w_xf = jax.random.normal(ks[1], (input_dem, hs_dem), jnp.float32) * 0.01
    w_xo = jax.random.normal(ks[2], (input_dem, hs_dem), jnp.float32) * 0.01
    w_xc = jax.random.normal(ks[3], (input_dem, hs_dem), jnp.float32) * 0.01
    w_hi = jax.random.normal(ks[4], (hs_dem, hs_dem), jnp.float32) * 0.01
    w_hf = jax.random.normal(ks[5], (hs_dem, hs_dem), jnp.float32) * 0.01
    w_ho = jax.random.normal(ks[6], (hs_dem, hs_dem), jnp.float32) * 0.01
    w_hc = jax.random.normal(ks[7], (hs_dem, hs_dem), jnp.float32) * 0.01

    wx = jnp.concatenate([w_xi, w_xf, w_xo, w_xc], axis=1)   # (Din, 4H)  [i|f|o|c]
    wh = jnp.concatenate([w_hi, w_hf, w_ho, w_hc], axis=1)   # (H,   4H)
    b = jnp.zeros((1, 4 * hs_dem), jnp.float32)              # b_i|b_f|b_o|b_c = 0

    # A T-step input sequence (the module is called once per time step).
    xs = jax.random.normal(ks[8], (seq_len, input_dem), jnp.float32)

    # Case 1: module-faithful zero initial state (as in __init__/clean_states).
    # Exact answer is identically zero; both implementations hit it exactly.
    h0 = jnp.zeros((1, hs_dem), jnp.float32)
    c0 = jnp.zeros((1, hs_dem), jnp.float32)
    hs, cs = lstm_sequence(xs, h0, c0, wx, wh, b)
    jax.block_until_ready((hs, cs))
    hs_r, cs_r = lstm_sequence_ref(xs, h0, c0, wx, wh, b)
    assert bool(jnp.all(jnp.isfinite(hs))) and bool(jnp.all(jnp.isfinite(cs)))
    assert jnp.allclose(hs, hs_r, atol=1e-6), "hidden mismatch (zero init)"
    assert jnp.allclose(cs, cs_r, atol=1e-6), "cell mismatch (zero init)"

    # Case 2: non-zero carried state (the module is stateful across calls);
    # exercises the gate math and normalisation non-trivially.
    h0b = jax.random.normal(ks[9], (1, hs_dem), jnp.float32) * 0.5
    c0b = jax.random.normal(ks[10], (1, hs_dem), jnp.float32)
    hs2, cs2 = lstm_sequence(xs, h0b, c0b, wx, wh, b)
    jax.block_until_ready((hs2, cs2))
    hs2_r, cs2_r = lstm_sequence_ref(xs, h0b, c0b, wx, wh, b)
    assert jnp.allclose(hs2, hs2_r, atol=1e-4, rtol=1e-4), "hidden mismatch (carried state)"
    assert jnp.allclose(cs2, cs2_r, atol=1e-4, rtol=1e-4), "cell mismatch (carried state)"

    print("KERNEL_OK")
</pallas_src>

<mosaic_0001>
module attributes {stable_mosaic.version = 11 : i64} {
  func.func @fused_lstm_kernel(%arg0: memref<8x16xf32, #tpu.memory_space<vmem>>, %arg1: memref<1x32xf32, #tpu.memory_space<vmem>>, %arg2: memref<1x32xf32, #tpu.memory_space<vmem>>, %arg3: memref<16x128xf32, #tpu.memory_space<vmem>>, %arg4: memref<32x128xf32, #tpu.memory_space<vmem>>, %arg5: memref<1x128xf32, #tpu.memory_space<vmem>>, %arg6: memref<8x32xf32, #tpu.memory_space<vmem>>, %arg7: memref<8x32xf32, #tpu.memory_space<vmem>>) attributes {dimension_semantics = [], scalar_prefetch = 0 : i64, scratch_operands = 0 : i64, tpu.core_type = #tpu.core_type<tc>} {
    %c0 = arith.constant 0 : index
    %c0_0 = arith.constant 0 : index
    %0 = vector.load %arg0[%c0, %c0_0] : memref<8x16xf32, #tpu.memory_space<vmem>>, vector<8x16xf32>
    %c0_1 = arith.constant 0 : index
    %c0_2 = arith.constant 0 : index
    %1 = vector.load %arg3[%c0_1, %c0_2] : memref<16x128xf32, #tpu.memory_space<vmem>>, vector<16x128xf32>
    %cst = arith.constant dense<0.000000e+00> : vector<8x128xf32>
    %2 = tpu.matmul %0, %1, %cst {dimension_numbers = #tpu.dot_dimension_numbers<[1], [0], [0], [1], [0, 0, 1, 1], [], []>, precision = #tpu.contract_precision<fp32>} : vector<8x16xf32>, vector<16x128xf32>, vector<8x128xf32> -> vector<8x128xf32>
    %c0_3 = arith.constant 0 : index
    %c0_4 = arith.constant 0 : index
    %3 = vector.load %arg5[%c0_3, %c0_4] : memref<1x128xf32, #tpu.memory_space<vmem>>, vector<1x128xf32>
    %4 = vector.broadcast %3 : vector<1x128xf32> to vector<8x128xf32>
    %5 = arith.addf %2, %4 : vector<8x128xf32>
    %c0_5 = arith.constant 0 : index
    %c0_6 = arith.constant 0 : index
    %6 = vector.load %arg1[%c0_5, %c0_6] : memref<1x32xf32, #tpu.memory_space<vmem>>, vector<1x32xf32>
    %c0_7 = arith.constant 0 : index
    %c0_8 = arith.constant 0 : index
    %7 = vector.load %arg2[%c0_7, %c0_8] : memref<1x32xf32, #tpu.memory_space<vmem>>, vector<1x32xf32>
    %8 = vector.extract_strided_slice %5 {offsets = [0, 0], sizes = [1, 128], strides = [1, 1]} : vector<8x128xf32> to vector<1x128xf32>
    %c0_9 = arith.constant 0 : index
    %c0_10 = arith.constant 0 : index
    %9 = vector.load %arg4[%c0_9, %c0_10] : memref<32x128xf32, #tpu.memory_space<vmem>>, vector<32x128xf32>
    %cst_11 = arith.constant dense<0.000000e+00> : vector<1x128xf32>
    %10 = tpu.matmul %6, %9, %cst_11 {dimension_numbers = #tpu.dot_dimension_numbers<[1], [0], [0], [1], [0, 0, 1, 1], [], []>, precision = #tpu.contract_precision<fp32>} : vector<1x32xf32>, vector<32x128xf32>, vector<1x128xf32> -> vector<1x128xf32>
    %11 = arith.addf %8, %10 : vector<1x128xf32>
    %12 = arith.negf %11 : vector<1x128xf32>
    %13 = math.exp %12 : vector<1x128xf32>
    %cst_12 = arith.constant 1.000000e+00 : f32
    %14 = vector.broadcast %cst_12 : f32 to vector<1x128xf32>
    %15 = arith.addf %14, %13 : vector<1x128xf32>
    %16 = arith.divf %14, %15 : vector<1x128xf32>
    %17 = vector.extract_strided_slice %16 {offsets = [0, 32], sizes = [1, 32], strides = [1, 1]} : vector<1x128xf32> to vector<1x32xf32>
    %18 = vector.extract_strided_slice %16 {offsets = [0, 64], sizes = [1, 32], strides = [1, 1]} : vector<1x128xf32> to vector<1x32xf32>
    %19 = arith.mulf %17, %7 : vector<1x32xf32>
    %20 = vector.shape_cast %19 : vector<1x32xf32> to vector<1x1x32xf32>
    %cst_13 = arith.constant dense<0.000000e+00> : vector<1xf32>
    %21 = vector.multi_reduction <add>, %20, %cst_13 [1, 2] : vector<1x1x32xf32> to vector<1xf32>
    %22 = vector.shape_cast %21 : vector<1xf32> to vector<1x1x1xf32>
    %23 = vector.extract %22[0, 0, 0] : f32 from vector<1x1x1xf32>
    %24 = vector.broadcast %23 : f32 to vector<1x1xf32>
    %cst_14 = arith.constant 3.125000e-02 : f32
    %25 = vector.broadcast %cst_14 : f32 to vector<1x1xf32>
    %26 = arith.mulf %24, %25 : vector<1x1xf32>
    %27 = vector.broadcast %26 : vector<1x1xf32> to vector<1x32xf32>
    %28 = arith.subf %19, %27 : vector<1x32xf32>
    %29 = arith.mulf %28, %28 : vector<1x32xf32>
    %30 = vector.shape_cast %29 : vector<1x32xf32> to vector<1x1x32xf32>
    %cst_15 = arith.constant dense<0.000000e+00> : vector<1xf32>
    %31 = vector.multi_reduction <add>, %30, %cst_15 [1, 2] : vector<1x1x32xf32> to vector<1xf32>
    %32 = vector.shape_cast %31 : vector<1xf32> to vector<1x1x1xf32>
    %33 = vector.extract %32[0, 0, 0] : f32 from vector<1x1x1xf32>
    %34 = vector.broadcast %33 : f32 to vector<1x1xf32>
    %cst_16 = arith.constant 0.0322580636 : f32
    %35 = vector.broadcast %cst_16 : f32 to vector<1x1xf32>
    %36 = arith.mulf %34, %35 : vector<1x1xf32>
    %37 = math.sqrt %36 : vector<1x1xf32>
    %cst_17 = arith.constant 9.99999974E-6 : f32
    %38 = vector.broadcast %cst_17 : f32 to vector<1x1xf32>
    %39 = arith.addf %37, %38 : vector<1x1xf32>
    %40 = tpu.reciprocal %39 : vector<1x1xf32> -> vector<1x1xf32>
    %41 = vector.broadcast %40 : vector<1x1xf32> to vector<1x32xf32>
    %42 = arith.mulf %28, %41 : vector<1x32xf32>
    %43 = math.tanh %42 : vector<1x32xf32>
    %44 = arith.mulf %18, %43 : vector<1x32xf32>
    %45 = vector.extract_strided_slice %5 {offsets = [1, 0], sizes = [1, 128], strides = [1, 1]} : vector<8x128xf32> to vector<1x128xf32>
    %c0_18 = arith.constant 0 : index
    %c0_19 = arith.constant 0 : index
    %46 = vector.load %arg4[%c0_18, %c0_19] : memref<32x128xf32, #tpu.memory_space<vmem>>, vector<32x128xf32>
    %cst_20 = arith.constant dense<0.000000e+00> : vector<1x128xf32>
    %47 = tpu.matmul %44, %46, %cst_20 {dimension_numbers = #tpu.dot_dimension_numbers<[1], [0], [0], [1], [0, 0, 1, 1], [], []>, precision = #tpu.contract_precision<fp32>} : vector<1x32xf32>, vector<32x128xf32>, vector<1x128xf32> -> vector<1x128xf32>
    %48 = arith.addf %45, %47 : vector<1x128xf32>
    %49 = arith.negf %48 : vector<1x128xf32>
    %50 = math.exp %49 : vector<1x128xf32>
    %cst_21 = arith.constant 1.000000e+00 : f32
    %51 = vector.broadcast %cst_21 : f32 to vector<1x128xf32>
    %52 = arith.addf %51, %50 : vector<1x128xf32>
    %53 = arith.divf %51, %52 : vector<1x128xf32>
    %54 = vector.extract_strided_slice %53 {offsets = [0, 32], sizes = [1, 32], strides = [1, 1]} : vector<1x128xf32> to vector<1x32xf32>
    %55 = vector.extract_strided_slice %53 {offsets = [0, 64], sizes = [1, 32], strides = [1, 1]} : vector<1x128xf32> to vector<1x32xf32>
    %56 = arith.mulf %54, %42 : vector<1x32xf32>
    %57 = vector.shape_cast %56 : vector<1x32xf32> to vector<1x1x32xf32>
    %cst_22 = arith.constant dense<0.000000e+00> : vector<1xf32>
    %58 = vector.multi_reduction <add>, %57, %cst_22 [1, 2] : vector<1x1x32xf32> to vector<1xf32>
    %59 = vector.shape_cast %58 : vector<1xf32> to vector<1x1x1xf32>
    %60 = vector.extract %59[0, 0, 0] : f32 from vector<1x1x1xf32>
    %61 = vector.broadcast %60 : f32 to vector<1x1xf32>
    %cst_23 = arith.constant 3.125000e-02 : f32
    %62 = vector.broadcast %cst_23 : f32 to vector<1x1xf32>
    %63 = arith.mulf %61, %62 : vector<1x1xf32>
    %64 = vector.broadcast %63 : vector<1x1xf32> to vector<1x32xf32>
    %65 = arith.subf %56, %64 : vector<1x32xf32>
    %66 = arith.mulf %65, %65 : vector<1x32xf32>
    %67 = vector.shape_cast %66 : vector<1x32xf32> to vector<1x1x32xf32>
    %cst_24 = arith.constant dense<0.000000e+00> : vector<1xf32>
    %68 = vector.multi_reduction <add>, %67, %cst_24 [1, 2] : vector<1x1x32xf32> to vector<1xf32>
    %69 = vector.shape_cast %68 : vector<1xf32> to vector<1x1x1xf32>
    %70 = vector.extract %69[0, 0, 0] : f32 from vector<1x1x1xf32>
    %71 = vector.broadcast %70 : f32 to vector<1x1xf32>
    %cst_25 = arith.constant 0.0322580636 : f32
    %72 = vector.broadcast %cst_25 : f32 to vector<1x1xf32>
    %73 = arith.mulf %71, %72 : vector<1x1xf32>
    %74 = math.sqrt %73 : vector<1x1xf32>
    %cst_26 = arith.constant 9.99999974E-6 : f32
    %75 = vector.broadcast %cst_26 : f32 to vector<1x1xf32>
    %76 = arith.addf %74, %75 : vector<1x1xf32>
    %77 = tpu.reciprocal %76 : vector<1x1xf32> -> vector<1x1xf32>
    %78 = vector.broadcast %77 : vector<1x1xf32> to vector<1x32xf32>
    %79 = arith.mulf %65, %78 : vector<1x32xf32>
    %80 = math.tanh %79 : vector<1x32xf32>
    %81 = arith.mulf %55, %80 : vector<1x32xf32>
    %82 = vector.extract_strided_slice %5 {offsets = [2, 0], sizes = [1, 128], strides = [1, 1]} : vector<8x128xf32> to vector<1x128xf32>
    %c0_27 = arith.constant 0 : index
    %c0_28 = arith.constant 0 : index
    %83 = vector.load %arg4[%c0_27, %c0_28] : memref<32x128xf32, #tpu.memory_space<vmem>>, vector<32x128xf32>
    %cst_29 = arith.constant dense<0.000000e+00> : vector<1x128xf32>
    %84 = tpu.matmul %81, %83, %cst_29 {dimension_numbers = #tpu.dot_dimension_numbers<[1], [0], [0], [1], [0, 0, 1, 1], [], []>, precision = #tpu.contract_precision<fp32>} : vector<1x32xf32>, vector<32x128xf32>, vector<1x128xf32> -> vector<1x128xf32>
    %85 = arith.addf %82, %84 : vector<1x128xf32>
    %86 = arith.negf %85 : vector<1x128xf32>
    %87 = math.exp %86 : vector<1x128xf32>
    %cst_30 = arith.constant 1.000000e+00 : f32
    %88 = vector.broadcast %cst_30 : f32 to vector<1x128xf32>
    %89 = arith.addf %88, %87 : vector<1x128xf32>
    %90 = arith.divf %88, %89 : vector<1x128xf32>
    %91 = vector.extract_strided_slice %90 {offsets = [0, 32], sizes = [1, 32], strides = [1, 1]} : vector<1x128xf32> to vector<1x32xf32>
    %92 = vector.extract_strided_slice %90 {offsets = [0, 64], sizes = [1, 32], strides = [1, 1]} : vector<1x128xf32> to vector<1x32xf32>
    %93 = arith.mulf %91, %79 : vector<1x32xf32>
    %94 = vector.shape_cast %93 : vector<1x32xf32> to vector<1x1x32xf32>
    %cst_31 = arith.constant dense<0.000000e+00> : vector<1xf32>
    %95 = vector.multi_reduction <add>, %94, %cst_31 [1, 2] : vector<1x1x32xf32> to vector<1xf32>
    %96 = vector.shape_cast %95 : vector<1xf32> to vector<1x1x1xf32>
    %97 = vector.extract %96[0, 0, 0] : f32 from vector<1x1x1xf32>
    %98 = vector.broadcast %97 : f32 to vector<1x1xf32>
    %cst_32 = arith.constant 3.125000e-02 : f32
    %99 = vector.broadcast %cst_32 : f32 to vector<1x1xf32>
    %100 = arith.mulf %98, %99 : vector<1x1xf32>
    %101 = vector.broadcast %100 : vector<1x1xf32> to vector<1x32xf32>
    %102 = arith.subf %93, %101 : vector<1x32xf32>
    %103 = arith.mulf %102, %102 : vector<1x32xf32>
    %104 = vector.shape_cast %103 : vector<1x32xf32> to vector<1x1x32xf32>
    %cst_33 = arith.constant dense<0.000000e+00> : vector<1xf32>
    %105 = vector.multi_reduction <add>, %104, %cst_33 [1, 2] : vector<1x1x32xf32> to vector<1xf32>
    %106 = vector.shape_cast %105 : vector<1xf32> to vector<1x1x1xf32>
    %107 = vector.extract %106[0, 0, 0] : f32 from vector<1x1x1xf32>
    %108 = vector.broadcast %107 : f32 to vector<1x1xf32>
    %cst_34 = arith.constant 0.0322580636 : f32
    %109 = vector.broadcast %cst_34 : f32 to vector<1x1xf32>
    %110 = arith.mulf %108, %109 : vector<1x1xf32>
    %111 = math.sqrt %110 : vector<1x1xf32>
    %cst_35 = arith.constant 9.99999974E-6 : f32
    %112 = vector.broadcast %cst_35 : f32 to vector<1x1xf32>
    %113 = arith.addf %111, %112 : vector<1x1xf32>
    %114 = tpu.reciprocal %113 : vector<1x1xf32> -> vector<1x1xf32>
    %115 = vector.broadcast %114 : vector<1x1xf32> to vector<1x32xf32>
    %116 = arith.mulf %102, %115 : vector<1x32xf32>
    %117 = math.tanh %116 : vector<1x32xf32>
    %118 = arith.mulf %92, %117 : vector<1x32xf32>
    %119 = vector.extract_strided_slice %5 {offsets = [3, 0], sizes = [1, 128], strides = [1, 1]} : vector<8x128xf32> to vector<1x128xf32>
    %c0_36 = arith.constant 0 : index
    %c0_37 = arith.constant 0 : index
    %120 = vector.load %arg4[%c0_36, %c0_37] : memref<32x128xf32, #tpu.memory_space<vmem>>, vector<32x128xf32>
    %cst_38 = arith.constant dense<0.000000e+00> : vector<1x128xf32>
    %121 = tpu.matmul %118, %120, %cst_38 {dimension_numbers = #tpu.dot_dimension_numbers<[1], [0], [0], [1], [0, 0, 1, 1], [], []>, precision = #tpu.contract_precision<fp32>} : vector<1x32xf32>, vector<32x128xf32>, vector<1x128xf32> -> vector<1x128xf32>
    %122 = arith.addf %119, %121 : vector<1x128xf32>
    %123 = arith.negf %122 : vector<1x128xf32>
    %124 = math.exp %123 : vector<1x128xf32>
    %cst_39 = arith.constant 1.000000e+00 : f32
    %125 = vector.broadcast %cst_39 : f32 to vector<1x128xf32>
    %126 = arith.addf %125, %124 : vector<1x128xf32>
    %127 = arith.divf %125, %126 : vector<1x128xf32>
    %128 = vector.extract_strided_slice %127 {offsets = [0, 32], sizes = [1, 32], strides = [1, 1]} : vector<1x128xf32> to vector<1x32xf32>
    %129 = vector.extract_strided_slice %127 {offsets = [0, 64], sizes = [1, 32], strides = [1, 1]} : vector<1x128xf32> to vector<1x32xf32>
    %130 = arith.mulf %128, %116 : vector<1x32xf32>
    %131 = vector.shape_cast %130 : vector<1x32xf32> to vector<1x1x32xf32>
    %cst_40 = arith.constant dense<0.000000e+00> : vector<1xf32>
    %132 = vector.multi_reduction <add>, %131, %cst_40 [1, 2] : vector<1x1x32xf32> to vector<1xf32>
    %133 = vector.shape_cast %132 : vector<1xf32> to vector<1x1x1xf32>
    %134 = vector.extract %133[0, 0, 0] : f32 from vector<1x1x1xf32>
    %135 = vector.broadcast %134 : f32 to vector<1x1xf32>
    %cst_41 = arith.constant 3.125000e-02 : f32
    %136 = vector.broadcast %cst_41 : f32 to vector<1x1xf32>
    %137 = arith.mulf %135, %136 : vector<1x1xf32>
    %138 = vector.broadcast %137 : vector<1x1xf32> to vector<1x32xf32>
    %139 = arith.subf %130, %138 : vector<1x32xf32>
    %140 = arith.mulf %139, %139 : vector<1x32xf32>
    %141 = vector.shape_cast %140 : vector<1x32xf32> to vector<1x1x32xf32>
    %cst_42 = arith.constant dense<0.000000e+00> : vector<1xf32>
    %142 = vector.multi_reduction <add>, %141, %cst_42 [1, 2] : vector<1x1x32xf32> to vector<1xf32>
    %143 = vector.shape_cast %142 : vector<1xf32> to vector<1x1x1xf32>
    %144 = vector.extract %143[0, 0, 0] : f32 from vector<1x1x1xf32>
    %145 = vector.broadcast %144 : f32 to vector<1x1xf32>
    %cst_43 = arith.constant 0.0322580636 : f32
    %146 = vector.broadcast %cst_43 : f32 to vector<1x1xf32>
    %147 = arith.mulf %145, %146 : vector<1x1xf32>
    %148 = math.sqrt %147 : vector<1x1xf32>
    %cst_44 = arith.constant 9.99999974E-6 : f32
    %149 = vector.broadcast %cst_44 : f32 to vector<1x1xf32>
    %150 = arith.addf %148, %149 : vector<1x1xf32>
    %151 = tpu.reciprocal %150 : vector<1x1xf32> -> vector<1x1xf32>
    %152 = vector.broadcast %151 : vector<1x1xf32> to vector<1x32xf32>
    %153 = arith.mulf %139, %152 : vector<1x32xf32>
    %154 = math.tanh %153 : vector<1x32xf32>
    %155 = arith.mulf %129, %154 : vector<1x32xf32>
    %156 = vector.extract_strided_slice %5 {offsets = [4, 0], sizes = [1, 128], strides = [1, 1]} : vector<8x128xf32> to vector<1x128xf32>
    %c0_45 = arith.constant 0 : index
    %c0_46 = arith.constant 0 : index
    %157 = vector.load %arg4[%c0_45, %c0_46] : memref<32x128xf32, #tpu.memory_space<vmem>>, vector<32x128xf32>
    %cst_47 = arith.constant dense<0.000000e+00> : vector<1x128xf32>
    %158 = tpu.matmul %155, %157, %cst_47 {dimension_numbers = #tpu.dot_dimension_numbers<[1], [0], [0], [1], [0, 0, 1, 1], [], []>, precision = #tpu.contract_precision<fp32>} : vector<1x32xf32>, vector<32x128xf32>, vector<1x128xf32> -> vector<1x128xf32>
    %159 = arith.addf %156, %158 : vector<1x128xf32>
    %160 = arith.negf %159 : vector<1x128xf32>
    %161 = math.exp %160 : vector<1x128xf32>
    %cst_48 = arith.constant 1.000000e+00 : f32
    %162 = vector.broadcast %cst_48 : f32 to vector<1x128xf32>
    %163 = arith.addf %162, %161 : vector<1x128xf32>
    %164 = arith.divf %162, %163 : vector<1x128xf32>
    %165 = vector.extract_strided_slice %164 {offsets = [0, 32], sizes = [1, 32], strides = [1, 1]} : vector<1x128xf32> to vector<1x32xf32>
    %166 = vector.extract_strided_slice %164 {offsets = [0, 64], sizes = [1, 32], strides = [1, 1]} : vector<1x128xf32> to vector<1x32xf32>
    %167 = arith.mulf %165, %153 : vector<1x32xf32>
    %168 = vector.shape_cast %167 : vector<1x32xf32> to vector<1x1x32xf32>
    %cst_49 = arith.constant dense<0.000000e+00> : vector<1xf32>
    %169 = vector.multi_reduction <add>, %168, %cst_49 [1, 2] : vector<1x1x32xf32> to vector<1xf32>
    %170 = vector.shape_cast %169 : vector<1xf32> to vector<1x1x1xf32>
    %171 = vector.extract %170[0, 0, 0] : f32 from vector<1x1x1xf32>
    %172 = vector.broadcast %171 : f32 to vector<1x1xf32>
    %cst_50 = arith.constant 3.125000e-02 : f32
    %173 = vector.broadcast %cst_50 : f32 to vector<1x1xf32>
    %174 = arith.mulf %172, %173 : vector<1x1xf32>
    %175 = vector.broadcast %174 : vector<1x1xf32> to vector<1x32xf32>
    %176 = arith.subf %167, %175 : vector<1x32xf32>
    %177 = arith.mulf %176, %176 : vector<1x32xf32>
    %178 = vector.shape_cast %177 : vector<1x32xf32> to vector<1x1x32xf32>
    %cst_51 = arith.constant dense<0.000000e+00> : vector<1xf32>
    %179 = vector.multi_reduction <add>, %178, %cst_51 [1, 2] : vector<1x1x32xf32> to vector<1xf32>
    %180 = vector.shape_cast %179 : vector<1xf32> to vector<1x1x1xf32>
    %181 = vector.extract %180[0, 0, 0] : f32 from vector<1x1x1xf32>
    %182 = vector.broadcast %181 : f32 to vector<1x1xf32>
    %cst_52 = arith.constant 0.0322580636 : f32
    %183 = vector.broadcast %cst_52 : f32 to vector<1x1xf32>
    %184 = arith.mulf %182, %183 : vector<1x1xf32>
    %185 = math.sqrt %184 : vector<1x1xf32>
    %cst_53 = arith.constant 9.99999974E-6 : f32
    %186 = vector.broadcast %cst_53 : f32 to vector<1x1xf32>
    %187 = arith.addf %185, %186 : vector<1x1xf32>
    %188 = tpu.reciprocal %187 : vector<1x1xf32> -> vector<1x1xf32>
    %189 = vector.broadcast %188 : vector<1x1xf32> to vector<1x32xf32>
    %190 = arith.mulf %176, %189 : vector<1x32xf32>
    %191 = math.tanh %190 : vector<1x32xf32>
    %192 = arith.mulf %166, %191 : vector<1x32xf32>
    %193 = vector.extract_strided_slice %5 {offsets = [5, 0], sizes = [1, 128], strides = [1, 1]} : vector<8x128xf32> to vector<1x128xf32>
    %c0_54 = arith.constant 0 : index
    %c0_55 = arith.constant 0 : index
    %194 = vector.load %arg4[%c0_54, %c0_55] : memref<32x128xf32, #tpu.memory_space<vmem>>, vector<32x128xf32>
    %cst_56 = arith.constant dense<0.000000e+00> : vector<1x128xf32>
    %195 = tpu.matmul %192, %194, %cst_56 {dimension_numbers = #tpu.dot_dimension_numbers<[1], [0], [0], [1], [0, 0, 1, 1], [], []>, precision = #tpu.contract_precision<fp32>} : vector<1x32xf32>, vector<32x128xf32>, vector<1x128xf32> -> vector<1x128xf32>
    %196 = arith.addf %193, %195 : vector<1x128xf32>
    %197 = arith.negf %196 : vector<1x128xf32>
    %198 = math.exp %197 : vector<1x128xf32>
    %cst_57 = arith.constant 1.000000e+00 : f32
    %199 = vector.broadcast %cst_57 : f32 to vector<1x128xf32>
    %200 = arith.addf %199, %198 : vector<1x128xf32>
    %201 = arith.divf %199, %200 : vector<1x128xf32>
    %202 = vector.extract_strided_slice %201 {offsets = [0, 32], sizes = [1, 32], strides = [1, 1]} : vector<1x128xf32> to vector<1x32xf32>
    %203 = vector.extract_strided_slice %201 {offsets = [0, 64], sizes = [1, 32], strides = [1, 1]} : vector<1x128xf32> to vector<1x32xf32>
    %204 = arith.mulf %202, %190 : vector<1x32xf32>
    %205 = vector.shape_cast %204 : vector<1x32xf32> to vector<1x1x32xf32>
    %cst_58 = arith.constant dense<0.000000e+00> : vector<1xf32>
    %206 = vector.multi_reduction <add>, %205, %cst_58 [1, 2] : vector<1x1x32xf32> to vector<1xf32>
    %207 = vector.shape_cast %206 : vector<1xf32> to vector<1x1x1xf32>
    %208 = vector.extract %207[0, 0, 0] : f32 from vector<1x1x1xf32>
    %209 = vector.broadcast %208 : f32 to vector<1x1xf32>
    %cst_59 = arith.constant 3.125000e-02 : f32
    %210 = vector.broadcast %cst_59 : f32 to vector<1x1xf32>
    %211 = arith.mulf %209, %210 : vector<1x1xf32>
    %212 = vector.broadcast %211 : vector<1x1xf32> to vector<1x32xf32>
    %213 = arith.subf %204, %212 : vector<1x32xf32>
    %214 = arith.mulf %213, %213 : vector<1x32xf32>
    %215 = vector.shape_cast %214 : vector<1x32xf32> to vector<1x1x32xf32>
    %cst_60 = arith.constant dense<0.000000e+00> : vector<1xf32>
    %216 = vector.multi_reduction <add>, %215, %cst_60 [1, 2] : vector<1x1x32xf32> to vector<1xf32>
    %217 = vector.shape_cast %216 : vector<1xf32> to vector<1x1x1xf32>
    %218 = vector.extract %217[0, 0, 0] : f32 from vector<1x1x1xf32>
    %219 = vector.broadcast %218 : f32 to vector<1x1xf32>
    %cst_61 = arith.constant 0.0322580636 : f32
    %220 = vector.broadcast %cst_61 : f32 to vector<1x1xf32>
    %221 = arith.mulf %219, %220 : vector<1x1xf32>
    %222 = math.sqrt %221 : vector<1x1xf32>
    %cst_62 = arith.constant 9.99999974E-6 : f32
    %223 = vector.broadcast %cst_62 : f32 to vector<1x1xf32>
    %224 = arith.addf %222, %223 : vector<1x1xf32>
    %225 = tpu.reciprocal %224 : vector<1x1xf32> -> vector<1x1xf32>
    %226 = vector.broadcast %225 : vector<1x1xf32> to vector<1x32xf32>
    %227 = arith.mulf %213, %226 : vector<1x32xf32>
    %228 = math.tanh %227 : vector<1x32xf32>
    %229 = arith.mulf %203, %228 : vector<1x32xf32>
    %230 = vector.extract_strided_slice %5 {offsets = [6, 0], sizes = [1, 128], strides = [1, 1]} : vector<8x128xf32> to vector<1x128xf32>
    %c0_63 = arith.constant 0 : index
    %c0_64 = arith.constant 0 : index
    %231 = vector.load %arg4[%c0_63, %c0_64] : memref<32x128xf32, #tpu.memory_space<vmem>>, vector<32x128xf32>
    %cst_65 = arith.constant dense<0.000000e+00> : vector<1x128xf32>
    %232 = tpu.matmul %229, %231, %cst_65 {dimension_numbers = #tpu.dot_dimension_numbers<[1], [0], [0], [1], [0, 0, 1, 1], [], []>, precision = #tpu.contract_precision<fp32>} : vector<1x32xf32>, vector<32x128xf32>, vector<1x128xf32> -> vector<1x128xf32>
    %233 = arith.addf %230, %232 : vector<1x128xf32>
    %234 = arith.negf %233 : vector<1x128xf32>
    %235 = math.exp %234 : vector<1x128xf32>
    %cst_66 = arith.constant 1.000000e+00 : f32
    %236 = vector.broadcast %cst_66 : f32 to vector<1x128xf32>
    %237 = arith.addf %236, %235 : vector<1x128xf32>
    %238 = arith.divf %236, %237 : vector<1x128xf32>
    %239 = vector.extract_strided_slice %238 {offsets = [0, 32], sizes = [1, 32], strides = [1, 1]} : vector<1x128xf32> to vector<1x32xf32>
    %240 = vector.extract_strided_slice %238 {offsets = [0, 64], sizes = [1, 32], strides = [1, 1]} : vector<1x128xf32> to vector<1x32xf32>
    %241 = arith.mulf %239, %227 : vector<1x32xf32>
    %242 = vector.shape_cast %241 : vector<1x32xf32> to vector<1x1x32xf32>
    %cst_67 = arith.constant dense<0.000000e+00> : vector<1xf32>
    %243 = vector.multi_reduction <add>, %242, %cst_67 [1, 2] : vector<1x1x32xf32> to vector<1xf32>
    %244 = vector.shape_cast %243 : vector<1xf32> to vector<1x1x1xf32>
    %245 = vector.extract %244[0, 0, 0] : f32 from vector<1x1x1xf32>
    %246 = vector.broadcast %245 : f32 to vector<1x1xf32>
    %cst_68 = arith.constant 3.125000e-02 : f32
    %247 = vector.broadcast %cst_68 : f32 to vector<1x1xf32>
    %248 = arith.mulf %246, %247 : vector<1x1xf32>
    %249 = vector.broadcast %248 : vector<1x1xf32> to vector<1x32xf32>
    %250 = arith.subf %241, %249 : vector<1x32xf32>
    %251 = arith.mulf %250, %250 : vector<1x32xf32>
    %252 = vector.shape_cast %251 : vector<1x32xf32> to vector<1x1x32xf32>
    %cst_69 = arith.constant dense<0.000000e+00> : vector<1xf32>
    %253 = vector.multi_reduction <add>, %252, %cst_69 [1, 2] : vector<1x1x32xf32> to vector<1xf32>
    %254 = vector.shape_cast %253 : vector<1xf32> to vector<1x1x1xf32>
    %255 = vector.extract %254[0, 0, 0] : f32 from vector<1x1x1xf32>
    %256 = vector.broadcast %255 : f32 to vector<1x1xf32>
    %cst_70 = arith.constant 0.0322580636 : f32
    %257 = vector.broadcast %cst_70 : f32 to vector<1x1xf32>
    %258 = arith.mulf %256, %257 : vector<1x1xf32>
    %259 = math.sqrt %258 : vector<1x1xf32>
    %cst_71 = arith.constant 9.99999974E-6 : f32
    %260 = vector.broadcast %cst_71 : f32 to vector<1x1xf32>
    %261 = arith.addf %259, %260 : vector<1x1xf32>
    %262 = tpu.reciprocal %261 : vector<1x1xf32> -> vector<1x1xf32>
    %263 = vector.broadcast %262 : vector<1x1xf32> to vector<1x32xf32>
    %264 = arith.mulf %250, %263 : vector<1x32xf32>
    %265 = math.tanh %264 : vector<1x32xf32>
    %266 = arith.mulf %240, %265 : vector<1x32xf32>
    %267 = vector.extract_strided_slice %5 {offsets = [7, 0], sizes = [1, 128], strides = [1, 1]} : vector<8x128xf32> to vector<1x128xf32>
    %c0_72 = arith.constant 0 : index
    %c0_73 = arith.constant 0 : index
    %268 = vector.load %arg4[%c0_72, %c0_73] : memref<32x128xf32, #tpu.memory_space<vmem>>, vector<32x128xf32>
    %cst_74 = arith.constant dense<0.000000e+00> : vector<1x128xf32>
    %269 = tpu.matmul %266, %268, %cst_74 {dimension_numbers = #tpu.dot_dimension_numbers<[1], [0], [0], [1], [0, 0, 1, 1], [], []>, precision = #tpu.contract_precision<fp32>} : vector<1x32xf32>, vector<32x128xf32>, vector<1x128xf32> -> vector<1x128xf32>
    %270 = arith.addf %267, %269 : vector<1x128xf32>
    %271 = arith.negf %270 : vector<1x128xf32>
    %272 = math.exp %271 : vector<1x128xf32>
    %cst_75 = arith.constant 1.000000e+00 : f32
    %273 = vector.broadcast %cst_75 : f32 to vector<1x128xf32>
    %274 = arith.addf %273, %272 : vector<1x128xf32>
    %275 = arith.divf %273, %274 : vector<1x128xf32>
    %276 = vector.extract_strided_slice %275 {offsets = [0, 32], sizes = [1, 32], strides = [1, 1]} : vector<1x128xf32> to vector<1x32xf32>
    %277 = vector.extract_strided_slice %275 {offsets = [0, 64], sizes = [1, 32], strides = [1, 1]} : vector<1x128xf32> to vector<1x32xf32>
    %278 = arith.mulf %276, %264 : vector<1x32xf32>
    %279 = vector.shape_cast %278 : vector<1x32xf32> to vector<1x1x32xf32>
    %cst_76 = arith.constant dense<0.000000e+00> : vector<1xf32>
    %280 = vector.multi_reduction <add>, %279, %cst_76 [1, 2] : vector<1x1x32xf32> to vector<1xf32>
    %281 = vector.shape_cast %280 : vector<1xf32> to vector<1x1x1xf32>
    %282 = vector.extract %281[0, 0, 0] : f32 from vector<1x1x1xf32>
    %283 = vector.broadcast %282 : f32 to vector<1x1xf32>
    %cst_77 = arith.constant 3.125000e-02 : f32
    %284 = vector.broadcast %cst_77 : f32 to vector<1x1xf32>
    %285 = arith.mulf %283, %284 : vector<1x1xf32>
    %286 = vector.broadcast %285 : vector<1x1xf32> to vector<1x32xf32>
    %287 = arith.subf %278, %286 : vector<1x32xf32>
    %288 = arith.mulf %287, %287 : vector<1x32xf32>
    %289 = vector.shape_cast %288 : vector<1x32xf32> to vector<1x1x32xf32>
    %cst_78 = arith.constant dense<0.000000e+00> : vector<1xf32>
    %290 = vector.multi_reduction <add>, %289, %cst_78 [1, 2] : vector<1x1x32xf32> to vector<1xf32>
    %291 = vector.shape_cast %290 : vector<1xf32> to vector<1x1x1xf32>
    %292 = vector.extract %291[0, 0, 0] : f32 from vector<1x1x1xf32>
    %293 = vector.broadcast %292 : f32 to vector<1x1xf32>
    %cst_79 = arith.constant 0.0322580636 : f32
    %294 = vector.broadcast %cst_79 : f32 to vector<1x1xf32>
    %295 = arith.mulf %293, %294 : vector<1x1xf32>
    %296 = math.sqrt %295 : vector<1x1xf32>
    %cst_80 = arith.constant 9.99999974E-6 : f32
    %297 = vector.broadcast %cst_80 : f32 to vector<1x1xf32>
    %298 = arith.addf %296, %297 : vector<1x1xf32>
    %299 = tpu.reciprocal %298 : vector<1x1xf32> -> vector<1x1xf32>
    %300 = vector.broadcast %299 : vector<1x1xf32> to vector<1x32xf32>
    %301 = arith.mulf %287, %300 : vector<1x32xf32>
    %302 = math.tanh %301 : vector<1x32xf32>
    %303 = arith.mulf %277, %302 : vector<1x32xf32>
    %304 = tpu.concatenate %44, %81, %118, %155, %192, %229, %266, %303 in 0 : vector<1x32xf32>, vector<1x32xf32>, vector<1x32xf32>, vector<1x32xf32>, vector<1x32xf32>, vector<1x32xf32>, vector<1x32xf32>, vector<1x32xf32> -> vector<8x32xf32>
    %c0_81 = arith.constant 0 : index
    %c0_82 = arith.constant 0 : index
    %305 = vector.load %arg6[%c0_81, %c0_82] : memref<8x32xf32, #tpu.memory_space<vmem>>, vector<8x32xf32>
    tpu.vector_store %arg6[%c0_81, %c0_82], %304 {strides = array<i32>} : memref<8x32xf32, #tpu.memory_space<vmem>>, vector<8x32xf32>,
    %306 = tpu.concatenate %42, %79, %116, %153, %190, %227, %264, %301 in 0 : vector<1x32xf32>, vector<1x32xf32>, vector<1x32xf32>, vector<1x32xf32>, vector<1x32xf32>, vector<1x32xf32>, vector<1x32xf32>, vector<1x32xf32> -> vector<8x32xf32>
    %c0_83 = arith.constant 0 : index
    %c0_84 = arith.constant 0 : index
    %307 = vector.load %arg7[%c0_83, %c0_84] : memref<8x32xf32, #tpu.memory_space<vmem>>, vector<8x32xf32>
    tpu.vector_store %arg7[%c0_83, %c0_84], %306 {strides = array<i32>} : memref<8x32xf32, #tpu.memory_space<vmem>>, vector<8x32xf32>,
    return
  }
}

</mosaic_0001>

<bundles_post_ra>
// kernel: tpu_custom_call.1
= control target key start
LH: loop header
LB: loop body
LE: loop exit
PB: predicated region body
PF: predicated region fallthrough
CT: control target
= control target key end

     0   :  { %13 = vsyncpa [#allocation3], 0  ;;  %s3417_s0 = inlined_call_operand.hbm [shape: f32[8,16], index: 0, kind: input, shape index: {}]   ;;  %s3418_s1 = inlined_call_operand.hbm [shape: f32[1,32], index: 1, kind: input, shape index: {}]   ;;  %s3419_s2 = inlined_call_operand.vmem [shape: f32[1,32], index: 2, kind: input, shape index: {}]   ;;  %s3420_s3 = inlined_call_operand.hbm [shape: f32[16,128], index: 3, kind: input, shape index: {}]   ;;  %s3421_s4 = inlined_call_operand.hbm [shape: f32[32,128], index: 4, kind: input, shape index: {}]   ;;  %s3422_s5 = inlined_call_operand.vmem [shape: f32[1,128], index: 5, kind: input, shape index: {}]   ;;  %s3423_s6 = inlined_call_operand.hbm [shape: f32[8,32], index: 6, kind: output, shape index: {0}]   ;;  %s3424_s7 = inlined_call_operand.hbm [shape: f32[8,32], index: 7, kind: output, shape index: {1}]  }
   0x1   :  { %14 = vsyncpa [#allocation6], 0 }
   0x2   :  { %15 = vsyncpa [#allocation9], 0 }
   0x3   :  { %16 = vsyncpa [#allocation4], 0  ;;  %s34_s26 = sshll.u32 %s3418_s1, 4  ;;  %s35_s26 = int_to_ptr.hbm [resolvable:$true] %s34_s26 }
   0x4   :  { %17 = vsyncpa [#allocation12], 0  ;;  %s2914_s27 = smov [#allocation5]   ;;  %s23_s8 = sshll.u32 %s3417_s0, 4  ;;  %s24_s8 = int_to_ptr.hbm [resolvable:$true] %s23_s8 }
   0x5   :  { %s36_s28 = sshll.u32 %s2914_s27, 4  ;;  %s2915_s9 = smov [#allocation2]   ;;  %s37_s28 = int_to_ptr.vmem [resolvable:$true] %s36_s28 }
   0x6   :  { %39 = dma.hbm_to_vmem [thread:$0]  %s35_s26, 16, %s37_s28, [#allocation6]  }
   0x7   :  { %s25_s10 = sshll.u32 %s2915_s9, 4  ;;  %s46_s13 = sshll.u32 %s3420_s3, 4  ;;  %s26_s10 = int_to_ptr.vmem [resolvable:$true] %s25_s10  ;;  %s47_s13 = int_to_ptr.hbm [resolvable:$true] %s46_s13 }
   0x8   :  { %28 = dma.hbm_to_vmem [thread:$0]  %s24_s8, 128, %s26_s10, [#allocation3]  }
   0x9   :  { %s2916_s1 = smov [#allocation7]   ;;  %s59_s17 = sshll.u32 %s3421_s4, 4  ;;  %s60_s17 = int_to_ptr.hbm [resolvable:$true] %s59_s17 }
   0xa   :  { %s48_s14 = sshll.u32 %s2916_s1, 4  ;;  %s2917_s18 = smov 128   ;;  %s49_s14 = int_to_ptr.vmem [resolvable:$true] %s48_s14 }
   0xb   :  { %s2918_s0 = smov 8   ;;  %s2919_s19 = smov [#allocation8]  }
   0xc   :  { %54 = dma.hbm_to_vmem [thread:$0]  %s47_s13, 256, %s49_s14, [#allocation6], %s2917_s18, %s2917_s18, %s2918_s0  }
   0xd   :  { %s61_s20 = sshll.u32 %s2919_s19, 4  ;;  %s62_s20 = int_to_ptr.vmem [resolvable:$true] %s61_s20 }
   0xe   :  { %67 = dma.hbm_to_vmem [thread:$0]  %s60_s17, 512, %s62_s20, [#allocation9], %s2917_s18, %s2917_s18, %s2918_s0  }
   0xf   :  { %2904 = dma.done.wait [#allocation3], 128  }
  0x10   :  { %2905 = vsyncadd [#allocation3], 4294967168 }
  0x11   :  { %2906 = dma.done.wait [#allocation6], 272  }
  0x12   :  { %2907 = vsyncadd [#allocation6], 4294967024 }
  0x13   :  { %2908 = dma.done.wait [#allocation9], 512  }
  0x14   :  { %2909 = vsyncadd [#allocation9], 4294966784  ;;  %vm93_vm0 = vcmask 130048   ;;  %v88_v0 = vld [vmem:[#allocation7 + $0x8] sm:$0xff]  ;;  %v87_v1 = vld [vmem:[#allocation7] sm:$0xff]  ;;  %vm262_vm1 = vcmask 261120  }
  0x15   :  { %v86_v2 = vld [vmem:[#allocation2] sm:$0xff]  ;;  %v2977_v3 = vand.u32 4294901760, %v88_v0  ;;  %v2979_v4 = vand.u32 4294901760, %v87_v1  ;;  %v261_v6 = vld [vmem:[#allocation8 + $0x18] sm:$0xff]  ;;  %v260_v7 = vld [vmem:[#allocation8 + $0x10] sm:$0xff]  ;;  %vm481_vm6 = vcmask 253952  }
  0x16   :  { %v95_v5 = vsel %vm93_vm0, %v86_v2, 0  ;;  %v259_v8 = vld [vmem:[#allocation8 + $0x8] sm:$0xff]  ;;  %v2983_v10 = vand.u32 4294901760, %v261_v6  ;;  %v2985_v11 = vand.u32 4294901760, %v260_v7  ;;  %v258_v13 = vld [vmem:[#allocation8] sm:$0xff]  ;;  %s2922_s25 = smov 64  }
  0x17   :  { %v2981_v9 = vand.u32 4294901760, %v95_v5  ;;  %v2987_v12 = vand.u32 4294901760, %v259_v8  ;;  %v139_v14 = vsub.f32 %v88_v0, %v2977_v3  ;;  %196 = vmatpush.msra.mxu3 %v2977_v3  ;;  %112 = vmatpush.msra.mxu0 %v2977_v3  ;;  %v145_v15 = vsub.f32 %v87_v1, %v2979_v4  ;;  %v256_v17 = vld [vmem:[#allocation5] sm:$0x1]  ;;  %v2678_v22 = vld [vmem:[%s3419_s2] ss:$0 sm:$0xff] }
  0x18   :  { %v2993_v16 = vand.u32 4294901760, %v258_v13  ;;  %v2997_v19 = vsub.f32 %v261_v6, %v2983_v10  ;;  %v3000_v20 = vsub.f32 %v260_v7, %v2985_v11  ;;  %v264_v26 = vsel %vm262_vm1, %v256_v17, 0  ;;  %s2920_s2 = smov 32   ;;  %v2679_v51 = vld [vmem:[%s3422_s5] ss:$0 sm:$0xff]  ;;  %s2921_s5 = smov 96  }
  0x19   :  { %v116_v18 = vsub.f32 %v95_v5, %v2981_v9  ;;  %v3003_v21 = vsub.f32 %v259_v8, %v2987_v12  ;;  %171 = vmatpush.msra.mxu2 %v139_v14  ;;  %198 = vmatpush.msra.mxu3 %v2979_v4  ;;  %v140_v23 = vand.u32 4294901760, %v139_v14  ;;  %v146_v24 = vand.u32 4294901760, %v145_v15  ;;  %s2923_s16 = smov [#allocation10]   ;;  %s2599_s19 = sshll.u32 %s3423_s6, 4  ;;  %s2600_s19 = int_to_ptr.hbm [resolvable:$true] %s2599_s19 }
  0x1a   :  { %v3010_v25 = vsub.f32 %v258_v13, %v2993_v16  ;;  %114 = vmatpush.msra.mxu0 %v2979_v4  ;;  %v3015_v28 = vand.u32 4294901760, %v2997_v19  ;;  %v3018_v29 = vand.u32 4294901760, %v3000_v20  ;;  %473 = vrot.lane.b32.xlu0 %v2678_v22, %s2920_s2  ;;  %v286_v34 = vand.u32 4294901760, %v264_v26  ;;  %s2597_s17 = sshll.u32 %s2923_s16, 4  ;;  %s2924_s20 = smov [#allocation11]   ;;  %s2598_s17 = int_to_ptr.vmem [resolvable:$true] %s2597_s17 }
  0x1b   :  { %v117_v27 = vand.u32 4294901760, %v116_v18  ;;  %v3021_v30 = vand.u32 4294901760, %v3003_v21  ;;  %174 = vmatpush.msra.mxu2 %v145_v15  ;;  %v141_v31 = vsub.f32 %v139_v14, %v140_v23  ;;  %v147_v32 = vsub.f32 %v145_v15, %v146_v24  ;;  %s2608_s3 = sshll.u32 %s2924_s20, 4  ;;  %s2610_s21 = sshll.u32 %s3424_s7, 4  ;;  %s2609_s3 = int_to_ptr.vmem [resolvable:$true] %s2608_s3  ;;  %s2611_s21 = int_to_ptr.hbm [resolvable:$true] %s2610_s21 }
  0x1c   :  { %223 = vmatpush.msrb.mxu0 %v140_v23  ;;  %v3025_v33 = vand.u32 4294901760, %v3010_v25  ;;  %177 = vmatmul.f32.vlgmr.msra.gmra.mxu2 %v116_v18  ;;  %v310_v35 = vsub.f32 %v2997_v19, %v3015_v28  ;;  %v316_v37 = vsub.f32 %v3000_v20, %v3018_v29  ;;  %v287_v45 = vsub.f32 %v264_v26, %v286_v34 }
  0x1d   :  { %202 = vmatmul.f32.vlgmr.msra.gmra.mxu3 %v117_v27  ;;  %v118_v36 = vsub.f32 %v116_v18, %v117_v27  ;;  %279 = vmatpush.msrb.mxu2 %v2983_v10  ;;  %v142_v38 = vand.u32 4294901760, %v141_v31  ;;  %v148_v39 = vand.u32 4294901760, %v147_v32  ;;  %v322_v40 = vsub.f32 %v3003_v21, %v3021_v30 }
  0x1e   :  { %227 = vmatpush.msrb.mxu0 %v146_v24  ;;  %v328_v41 = vsub.f32 %v3010_v25, %v3025_v33  ;;  %v3036_v42 = vand.u32 4294901760, %v310_v35  ;;  %v3038_v44 = vand.u32 4294901760, %v316_v37  ;;  %v288_v47 = vand.u32 4294901760, %v287_v45 }
  0x1f   :  { %v119_v43 = vand.u32 4294901760, %v118_v36  ;;  %143 = vmatpush.msra.mxu1 %v142_v38  ;;  %281 = vmatpush.msrb.mxu2 %v2985_v11  ;;  %v3042_v46 = vand.u32 4294901760, %v322_v40 }
  0x20   :  { %312 = vmatpush.msrb.mxu3 %v3036_v42  ;;  %v3047_v48 = vand.u32 4294901760, %v328_v41  ;;  %v289_v49 = vsub.f32 %v287_v45, %v288_v47 }
  0x21   :  { %120 = vmatmul.f32.vlgmr.msra.gmra.mxu0 %v119_v43  ;;  %149 = vmatpush.msra.mxu1 %v148_v39 }
  0x22   :  { %283 = vmatpush.msrb.mxu2 %v2987_v12  ;;  %318 = vmatpush.msrb.mxu3 %v3038_v44  ;;  %v290_v50 = vand.u32 4294901760, %v289_v49 }
  0x23   :  { %151 = vmatmul.f32.vlgmr.msra.gmra.mxu1 %v2981_v9  ;;  %350 = vmatpush.msra.mxu0 %v2997_v19 }
  0x24   :  { %248 = vmatpush.msrb.mxu1 %v2977_v3  ;;  %285 = vmatpush.msrb.mxu2 %v2993_v16 }
  0x25   :  { %324 = vmatpush.msrb.mxu3 %v3042_v46  ;;  %291 = vmatmul.f32.vlgmr.msrb.gmra.mxu2 %v290_v50 }
  0x26   :  { %408 = vmatpush.msra.mxu2 %v3015_v28  ;;  %250 = vmatpush.msrb.mxu1 %v2979_v4 }
  0x27   :  { %330 = vmatpush.msrb.mxu3 %v3047_v48  ;;  %353 = vmatpush.msra.mxu0 %v3000_v20 }
  0x28   :  { %332 = vmatmul.f32.vlgmr.msrb.gmra.mxu3 %v286_v34  ;;  %412 = vmatpush.msra.mxu2 %v3018_v29 }
  0x29   :  { %229 = vmatmul.f32.vlgmr.msrb.gmra.mxu0 %v2981_v9  ;;  %439 = vmatpush.msra.mxu3 %v2983_v10 }
  0x2a   :  { %379 = vmatpush.msra.mxu1 %v2983_v10  ;;  %416 = vmatpush.msra.mxu2 %v3021_v30 }
  0x2b   :  { %252 = vmatmul.f32.vlgmr.msrb.gmra.mxu1 %v2981_v9  ;;  %441 = vmatpush.msra.mxu3 %v2985_v11 }
  0x2c   :  { %356 = vmatpush.msra.mxu0 %v3003_v21  ;;  %381 = vmatpush.msra.mxu1 %v2985_v11 }
  0x2d   :  { %420 = vmatpush.msra.mxu2 %v3025_v33  ;;  %443 = vmatpush.msra.mxu3 %v2987_v12 }
  0x2e   :  { %359 = vmatpush.msra.mxu0 %v3010_v25  ;;  %383 = vmatpush.msra.mxu1 %v2987_v12 }
  0x2f   :  { %422 = vmatmul.f32.vlgmr.msra.gmra.mxu2 %v286_v34  ;;  %445 = vmatpush.msra.mxu3 %v2993_v16 }
  0x30   :  { %635 = vmatpush.msrb.mxu2 %v2997_v19  ;;  %385 = vmatpush.msra.mxu1 %v2993_v16 }
  0x31   :  { %362 = vmatmul.f32.vlgmr.msra.gmra.mxu0 %v287_v45  ;;  %447 = vmatmul.f32.vlgmr.msra.gmra.mxu3 %v286_v34 }
  0x32   :  { %597 = vmatpush.msrb.mxu1 %v3036_v42  ;;  %638 = vmatpush.msrb.mxu2 %v3000_v20 }
  0x33   :  { %389 = vmatmul.f32.vlgmr.msra.gmra.mxu1 %v288_v47  ;;  %664 = vmatpush.msrb.mxu3 %v2983_v10 }
  0x34   :  { %603 = vmatpush.msrb.mxu1 %v3038_v44  ;;  %641 = vmatpush.msrb.mxu2 %v3003_v21 }
  0x35   :  { %564 = vmatpush.msrb.mxu0 %v2983_v10  ;;  %666 = vmatpush.msrb.mxu3 %v2985_v11 }
  0x36   :  { %609 = vmatpush.msrb.mxu1 %v3042_v46  ;;  %644 = vmatpush.msrb.mxu2 %v3010_v25 }
  0x37   :  { %566 = vmatpush.msrb.mxu0 %v2985_v11  ;;  %668 = vmatpush.msrb.mxu3 %v2987_v12 }
  0x38   :  { %615 = vmatpush.msrb.mxu1 %v3047_v48  ;;  %852 = vmatpush.msra.mxu2 %v2983_v10 }
  0x39   :  { %568 = vmatpush.msrb.mxu0 %v2987_v12  ;;  %670 = vmatpush.msrb.mxu3 %v2993_v16 }
  0x3a   :  { %724 = vmatpush.msra.mxu1 %v2983_v10  ;;  %854 = vmatpush.msra.mxu2 %v2985_v11 }
  0x3b   :  { %570 = vmatpush.msrb.mxu0 %v2993_v16  ;;  %885 = vmatpush.msra.mxu3 %v3036_v42 }
  0x3c   :  { %726 = vmatpush.msra.mxu1 %v2985_v11  ;;  %856 = vmatpush.msra.mxu2 %v2987_v12 }
  0x3d   :  { %693 = vmatpush.msra.mxu0 %v3015_v28  ;;  %891 = vmatpush.msra.mxu3 %v3038_v44 }
  0x3e   :  { %728 = vmatpush.msra.mxu1 %v2987_v12  ;;  %858 = vmatpush.msra.mxu2 %v2993_v16 }
  0x3f   :  { %697 = vmatpush.msra.mxu0 %v3018_v29  ;;  %897 = vmatpush.msra.mxu3 %v3042_v46 }
  0x40   :  { %730 = vmatpush.msra.mxu1 %v2993_v16 }
  0x41   :  { %701 = vmatpush.msra.mxu0 %v3021_v30  ;;  %903 = vmatpush.msra.mxu3 %v3047_v48 }
  0x43   :  { %705 = vmatpush.msra.mxu0 %v3025_v33 }
  0x8c   :  { %v474_v34 = vpop.permute.xlu0 %473 }
  0x9e   :  { %v121_v52 = vpop.f32.mrf.mxu0 }
  0x9f   :  { %v178_v54 = vpop.f32.mrf.mxu2  ;;  %v122_v56 = vadd.f32 %v2679_v51, %v121_v52 }
  0xa0   :  { %v152_v53 = vpop.f32.mrf.mxu1  ;;  %v203_v55 = vpop.f32.mrf.mxu3 }
  0xa1   :  { %v153_v57 = vadd.f32 %v152_v53, %v122_v56 }
  0xa3   :  { %v179_v60 = vadd.f32 %v178_v54, %v153_v57 }
  0xa5   :  { %v204_v0 = vadd.f32 %v203_v55, %v179_v60 }
  0xa6   :  { %v230_v58 = vpop.f32.mrf.mxu0 }
  0xa7   :  { %v231_v5 = vadd.f32 %v230_v58, %v204_v0 }
  0xa8   :  { %v253_v59 = vpop.f32.mrf.mxu1  ;;  %v292_v61 = vpop.f32.mrf.mxu2 }
  0xa9   :  { %v3107_v9 = vadd.f32 %v253_v59, %v231_v5 }
  0xab   :  { %v333_v62 = vpop.f32.mrf.mxu3 }
  0xac   :  { %v334_v63 = vadd.f32 %v333_v62, %v292_v61 }
  0xae   :  { %v363_v1 = vpop.f32.mrf.mxu0 }
  0xaf   :  { %v364_v2 = vadd.f32 %v363_v1, %v334_v63 }
  0xb0   :  { %v390_v3 = vpop.f32.mrf.mxu1 }
  0xb1   :  { %v391_v4 = vadd.f32 %v390_v3, %v364_v2 }
  0xb2   :  { %v423_v6 = vpop.f32.mrf.mxu2 }
  0xb3   :  { %v424_v7 = vadd.f32 %v423_v6, %v391_v4 }
  0xb4   :  { %v448_v8 = vpop.f32.mrf.mxu3 }
  0xb5   :  { %v449_v13 = vadd.f32 %v448_v8, %v424_v7 }
  0xb7   :  { %v451_v14 = vadd.f32 %v449_v13, %v3107_v9 }
  0xb9   :  { %v2627_v15 = vmul.f32 -1.442695, %v451_v14 }
  0xbb   :  { %2680 = vpow2.f32 %v2627_v15 }
  0xc1   :  { %v2681_v17 = vpop.eup %2680 }
  0xc2   :  { %v455_v18 = vadd.f32 1.0, %v2681_v17 }
  0xc4   :  { %2682 = vrcp.f32 %v455_v18  ;;  %v467_v26 = vand.u32 2147483648, %v455_v18  ;;  %v465_v31 = vand.u32 2147483647, %v455_v18  ;;  %vm461_vm3 = vweird.f32 %v455_v18 }
  0xc6   :  { %v468_v35 = vor.u32 1.1754944e-38, %v467_v26  ;;  %vm466_vm5 = vcmp.eq.f32.partialorder %v465_v31, 8.507059e+37 }
  0xca   :  { %v2683_v22 = vpop.eup %2682 }
  0xcb   :  { %v457_v23 = vmul.f32 %v2683_v22, %v455_v18  ;;  %vm462_vm2 = vweird.f32 %v2683_v22 }
  0xcc   :  { %vm463_vm4 = vmor %vm461_vm3, %vm462_vm2 }
  0xcd   :  { %v458_v24 = vsub.f32 1.0, %v457_v23 }
  0xcf   :  { %v459_v27 = vmul.f32 %v2683_v22, %v458_v24 }
  0xd1   :  { %v460_v32 = vadd.f32 %v2683_v22, %v459_v27 }
  0xd3   :  { %v464_v36 = vsel %vm463_vm4, %v2683_v22, %v460_v32 }
  0xd4   :  { %v3110_v37 = vsel %vm466_vm5, %v468_v35, %v464_v36 }
  0xd5   :  { %v476_v38 = vmul.f32 %v474_v34, %v3110_v37 }
  0xd7   :  { %478 = vrot.lane.b32.xlu0 %v476_v38, %s2921_s5 }
 0x149   :  { %v479_v39 = vpop.permute.xlu0 %478 }
 0x14a   :  { %v482_v40 = vsel %vm481_vm6, %v479_v39, 0.0 }
 0x14b   :  { %483 = vadd.xlane.f32.xlu1 %v482_v40 }
 0x1be   :  { %v484_v41 = vpop.xlane.xlu1 %483 }
 0x1bf   :  { %v485_v43 = vrot.slane %v484_v41, 4 }
 0x1c1   :  { %v486_v45 = vadd.f32 %v485_v43, %v484_v41 }
 0x1c3   :  { %v487_v47 = vrot.slane %v486_v45, 2 }
 0x1c5   :  { %v488_v49 = vadd.f32 %v487_v47, %v486_v45 }
 0x1c7   :  { %v489_v50 = vrot.slane %v488_v49, 1 }
 0x1c9   :  { %v490_v51 = vadd.f32 %v489_v50, %v488_v49 }
 0x1cb   :  { %2635 = vpush %v490_v51 }
 0x1fc   :  { %s2636_s23 = spop %2635 }
 0x1fd   :  { %v492_v52 = vstv %s2636_s23 }
 0x1fe   :  { %v493_v53 = vmul.f32 0.03125, %v492_v52 }
 0x200   :  { %v494_v54 = vsub.f32 %v476_v38, %v493_v53 }
 0x202   :  { %v495_v55 = vmul.f32 %v494_v54, %v494_v54 }
 0x204   :  { %497 = vrot.lane.b32.xlu1 %v495_v55, %s2921_s5 }
 0x276   :  { %v498_v56 = vpop.permute.xlu1 %497 }
 0x277   :  { %v500_v57 = vsel %vm481_vm6, %v498_v56, 0.0 }
 0x278   :  { %501 = vadd.xlane.f32.xlu2 %v500_v57 }
 0x2eb   :  { %v502_v58 = vpop.xlane.xlu2 %501 }
 0x2ec   :  { %v503_v59 = vrot.slane %v502_v58, 4 }
 0x2ee   :  { %v504_v60 = vadd.f32 %v503_v59, %v502_v58 }
 0x2f0   :  { %v505_v61 = vrot.slane %v504_v60, 2 }
 0x2f2   :  { %v506_v62 = vadd.f32 %v505_v61, %v504_v60 }
 0x2f4   :  { %v507_v63 = vrot.slane %v506_v62, 1 }
 0x2f6   :  { %v508_v0 = vadd.f32 %v507_v63, %v506_v62 }
 0x2f8   :  { %2637 = vpush %v508_v0 }
 0x329   :  { %s2638_s24 = spop %2637 }
 0x32a   :  { %v510_v1 = vstv %s2638_s24 }
 0x32b   :  { %v511_v2 = vmul.f32 0.032258064, %v510_v1 }
 0x32d   :  { %2684 = vrsqrt.f32 %v511_v2  ;;  %vm519_vm7 = vcmp.eq.f32.partialorder %v511_v2, inf  ;;  %v522_v14 = vand.u32 2147483648, %v511_v2  ;;  %vm521_vm8 = vcmp.eq.f32.partialorder %v511_v2, 0.0 }
 0x333   :  { %v2685_v3 = vpop.eup %2684 }
 0x334   :  { %v513_v4 = vmul.f32 %v2685_v3, %v511_v2 }
 0x336   :  { %v514_v5 = vmul.f32 %v2685_v3, %v513_v4 }
 0x338   :  { %v515_v6 = vmul.f32 0.5, %v514_v5 }
 0x33a   :  { %v516_v7 = vsub.f32 1.5, %v515_v6 }
 0x33c   :  { %v517_v8 = vmul.f32 %v2685_v3, %v516_v7 }
 0x33e   :  { %v518_v13 = vmul.f32 %v517_v8, %v511_v2 }
 0x340   :  { %v520_v15 = vsel %vm519_vm7, %v511_v2, %v518_v13 }
 0x341   :  { %v523_v17 = vsel %vm521_vm8, %v522_v14, %v520_v15 }
 0x342   :  { %v524_v18 = vadd.f32 1e-05, %v523_v17 }
 0x344   :  { %2686 = vrcp.f32 %v524_v18  ;;  %v536_v26 = vand.u32 2147483648, %v524_v18  ;;  %v534_v31 = vand.u32 2147483647, %v524_v18  ;;  %vm530_vm10 = vweird.f32 %v524_v18 }
 0x346   :  { %v537_v34 = vor.u32 1.1754944e-38, %v536_v26  ;;  %vm535_vm12 = vcmp.eq.f32.partialorder %v534_v31, 8.507059e+37 }
 0x34a   :  { %v2687_v22 = vpop.eup %2686 }
 0x34b   :  { %v526_v23 = vmul.f32 %v2687_v22, %v524_v18  ;;  %vm531_vm9 = vweird.f32 %v2687_v22 }
 0x34c   :  { %vm532_vm11 = vmor %vm530_vm10, %vm531_vm9 }
 0x34d   :  { %v527_v24 = vsub.f32 1.0, %v526_v23 }
 0x34f   :  { %v528_v27 = vmul.f32 %v2687_v22, %v527_v24 }
 0x351   :  { %v529_v32 = vadd.f32 %v2687_v22, %v528_v27 }
 0x353   :  { %v533_v35 = vsel %vm532_vm11, %v2687_v22, %v529_v32 }
 0x354   :  { %v538_v36 = vsel %vm535_vm12, %v537_v34, %v533_v35 }
 0x355   :  { %v3117_v38 = vmul.f32 %v538_v36, %v494_v54 }
 0x357   :  { %2688 = vtanh.f32 %v3117_v38  ;;  %v760_v18 = vrot.slane %v3117_v38, 7 }
 0x35d   :  { %v2689_v39 = vpop.eup %2688 }
 0x35e   :  { %542 = vrot.lane.b32.xlu2 %v2689_v39, %s2920_s2 }
 0x3b8   :  { %v543_v40 = vpop.permute.xlu2 %542 }
 0x3b9   :  { %v3122_v41 = vmul.f32 %v543_v40, %v3110_v37 }
 0x3bb   :  { %547 = vrot.lane.b32.xlu0 %v3122_v41, %s2922_s25 }
 0x42d   :  { %v548_v43 = vpop.permute.xlu0 %547 }
 0x42e   :  { %v549_v45 = vsel %vm262_vm1, %v548_v43, 0 }
 0x42f   :  { %v571_v47 = vand.u32 4294901760, %v549_v45 }
 0x431   :  { %v572_v49 = vsub.f32 %v549_v45, %v571_v47  ;;  %617 = vmatmul.f32.vlgmr.msrb.gmra.mxu1 %v571_v47 }
 0x432   :  { %952 = vmatpush.msrb.mxu1 %v2983_v10 }
 0x433   :  { %v573_v50 = vand.u32 4294901760, %v572_v49  ;;  %647 = vmatmul.f32.vlgmr.msrb.gmra.mxu2 %v572_v49 }
 0x434   :  { %954 = vmatpush.msrb.mxu1 %v2985_v11  ;;  %981 = vmatpush.msrb.mxu2 %v3015_v28 }
 0x435   :  { %v574_v37 = vsub.f32 %v572_v49, %v573_v50  ;;  %674 = vmatmul.f32.vlgmr.msrb.gmra.mxu3 %v573_v50 }
 0x436   :  { %956 = vmatpush.msrb.mxu1 %v2987_v12  ;;  %1012 = vmatpush.msrb.mxu3 %v2983_v10 }
 0x437   :  { %v575_v51 = vand.u32 4294901760, %v574_v37  ;;  %985 = vmatpush.msrb.mxu2 %v3018_v29 }
 0x438   :  { %958 = vmatpush.msrb.mxu1 %v2993_v16  ;;  %1014 = vmatpush.msrb.mxu3 %v2985_v11 }
 0x439   :  { %576 = vmatmul.f32.vlgmr.msrb.gmra.mxu0 %v575_v51  ;;  %732 = vmatmul.f32.vlgmr.msra.gmra.mxu1 %v571_v47 }
 0x43a   :  { %923 = vmatpush.msrb.mxu0 %v2997_v19  ;;  %1016 = vmatpush.msrb.mxu3 %v2987_v12 }
 0x43b   :  { %989 = vmatpush.msrb.mxu2 %v3021_v30  ;;  %1173 = vmatpush.msra.mxu1 %v3036_v42 }
 0x43c   :  { %926 = vmatpush.msrb.mxu0 %v3000_v20  ;;  %1018 = vmatpush.msrb.mxu3 %v2993_v16 }
 0x43d   :  { %993 = vmatpush.msrb.mxu2 %v3025_v33  ;;  %1179 = vmatpush.msra.mxu1 %v3038_v44 }
 0x43e   :  { %929 = vmatpush.msrb.mxu0 %v3003_v21 }
 0x43f   :  { %1185 = vmatpush.msra.mxu1 %v3042_v46 }
 0x440   :  { %932 = vmatpush.msrb.mxu0 %v3010_v25 }
 0x441   :  { %707 = vmatmul.f32.vlgmr.msra.gmra.mxu0 %v571_v47  ;;  %1191 = vmatpush.msra.mxu1 %v3047_v48 }
 0x442   :  { %1140 = vmatpush.msra.mxu0 %v2983_v10 }
 0x444   :  { %1142 = vmatpush.msra.mxu0 %v2985_v11 }
 0x446   :  { %1144 = vmatpush.msra.mxu0 %v2987_v12 }
 0x448   :  { %1146 = vmatpush.msra.mxu0 %v2993_v16 }
 0x4ae   :  { %v618_v52 = vpop.f32.mrf.mxu1 }
 0x4b6   :  { %v577_v53 = vpop.f32.mrf.mxu0  ;;  %v648_v55 = vpop.f32.mrf.mxu2 }
 0x4b7   :  { %v619_v54 = vadd.f32 %v618_v52, %v577_v53  ;;  %v733_v61 = vpop.f32.mrf.mxu1 }
 0x4b8   :  { %v675_v57 = vpop.f32.mrf.mxu3 }
 0x4b9   :  { %v649_v56 = vadd.f32 %v648_v55, %v619_v54 }
 0x4bb   :  { %v676_v58 = vadd.f32 %v675_v57, %v649_v56 }
 0x4be   :  { %v708_v59 = vpop.f32.mrf.mxu0 }
 0x4bf   :  { %v709_v60 = vadd.f32 %v708_v59, %v676_v58 }
 0x4c1   :  { %v734_v62 = vadd.f32 %v733_v61, %v709_v60 }
 0x4c3   :  { %v737_v63 = vrot.slane %v734_v62, 7 }
 0x4c5   :  { %v739_v0 = vadd.f32 %v737_v63, %v3107_v9 }
 0x4c7   :  { %v2628_v1 = vmul.f32 -1.442695, %v739_v0 }
 0x4c9   :  { %2690 = vpow2.f32 %v2628_v1 }
 0x4cf   :  { %v2691_v2 = vpop.eup %2690 }
 0x4d0   :  { %v743_v3 = vadd.f32 1.0, %v2691_v2 }
 0x4d2   :  { %2692 = vrcp.f32 %v743_v3  ;;  %v755_v7 = vand.u32 2147483648, %v743_v3  ;;  %v753_v13 = vand.u32 2147483647, %v743_v3  ;;  %vm749_vm14 = vweird.f32 %v743_v3 }
 0x4d4   :  { %v756_v15 = vor.u32 1.1754944e-38, %v755_v7  ;;  %vm754_vm0 = vcmp.eq.f32.partialorder %v753_v13, 8.507059e+37 }
 0x4d8   :  { %v2693_v4 = vpop.eup %2692 }
 0x4d9   :  { %v745_v5 = vmul.f32 %v2693_v4, %v743_v3  ;;  %vm750_vm13 = vweird.f32 %v2693_v4 }
 0x4da   :  { %vm751_vm15 = vmor %vm749_vm14, %vm750_vm13 }
 0x4db   :  { %v746_v6 = vsub.f32 1.0, %v745_v5 }
 0x4dd   :  { %v747_v8 = vmul.f32 %v2693_v4, %v746_v6 }
 0x4df   :  { %v748_v14 = vadd.f32 %v2693_v4, %v747_v8 }
 0x4e1   :  { %v752_v17 = vsel %vm751_vm15, %v2693_v4, %v748_v14 }
 0x4e2   :  { %v3153_v22 = vsel %vm754_vm0, %v756_v15, %v752_v17 }
 0x4e3   :  { %v762_v23 = vmul.f32 %v760_v18, %v3153_v22 }
 0x4e5   :  { %v764_v24 = vrot.slane %v762_v23, 1 }
 0x4e7   :  { %765 = vrot.lane.b32.xlu0 %v764_v24, %s2921_s5 }
 0x559   :  { %v766_v26 = vpop.permute.xlu0 %765 }
 0x55a   :  { %v768_v27 = vsel %vm481_vm6, %v766_v26, 0.0 }
 0x55b   :  { %769 = vadd.xlane.f32.xlu0 %v768_v27 }
 0x5ce   :  { %v770_v31 = vpop.xlane.xlu0 %769 }
 0x5cf   :  { %v771_v32 = vrot.slane %v770_v31, 4 }
 0x5d1   :  { %v772_v34 = vadd.f32 %v771_v32, %v770_v31 }
 0x5d3   :  { %v773_v35 = vrot.slane %v772_v34, 2 }
 0x5d5   :  { %v774_v36 = vadd.f32 %v773_v35, %v772_v34 }
 0x5d7   :  { %v775_v39 = vrot.slane %v774_v36, 1 }
 0x5d9   :  { %v776_v40 = vadd.f32 %v775_v39, %v774_v36 }
 0x5db   :  { %2639 = vpush %v776_v40 }
 0x60c   :  { %s2640_s26 = spop %2639 }
 0x60d   :  { %v778_v43 = vstv %s2640_s26 }
 0x60e   :  { %v779_v45 = vmul.f32 0.03125, %v778_v43 }
 0x610   :  { %v780_v47 = vsub.f32 %v762_v23, %v779_v45 }
 0x612   :  { %v781_v49 = vmul.f32 %v780_v47, %v780_v47 }
 0x614   :  { %v783_v50 = vrot.slane %v781_v49, 1 }
 0x616   :  { %784 = vrot.lane.b32.xlu2 %v783_v50, %s2921_s5 }
 0x670   :  { %v785_v37 = vpop.permute.xlu2 %784 }
 0x671   :  { %v787_v51 = vsel %vm481_vm6, %v785_v37, 0.0 }
 0x672   :  { %788 = vadd.xlane.f32.xlu1 %v787_v51 }
 0x6e5   :  { %v789_v52 = vpop.xlane.xlu1 %788 }
 0x6e6   :  { %v790_v53 = vrot.slane %v789_v52, 4 }
 0x6e8   :  { %v791_v54 = vadd.f32 %v790_v53, %v789_v52 }
 0x6ea   :  { %v792_v55 = vrot.slane %v791_v54, 2 }
 0x6ec   :  { %v793_v56 = vadd.f32 %v792_v55, %v791_v54 }
 0x6ee   :  { %v794_v57 = vrot.slane %v793_v56, 1 }
 0x6f0   :  { %v795_v58 = vadd.f32 %v794_v57, %v793_v56 }
 0x6f2   :  { %2641 = vpush %v795_v58 }
 0x723   :  { %s2642_s27 = spop %2641 }
 0x724   :  { %v797_v59 = vstv %s2642_s27 }
 0x725   :  { %v798_v60 = vmul.f32 0.032258064, %v797_v59 }
 0x727   :  { %2694 = vrsqrt.f32 %v798_v60  ;;  %vm806_vm2 = vcmp.eq.f32.partialorder %v798_v60, inf  ;;  %v809_v4 = vand.u32 2147483648, %v798_v60  ;;  %vm808_vm3 = vcmp.eq.f32.partialorder %v798_v60, 0.0 }
 0x72d   :  { %v2695_v61 = vpop.eup %2694 }
 0x72e   :  { %v800_v62 = vmul.f32 %v2695_v61, %v798_v60 }
 0x730   :  { %v801_v63 = vmul.f32 %v2695_v61, %v800_v62 }
 0x732   :  { %v802_v0 = vmul.f32 0.5, %v801_v63 }
 0x734   :  { %v803_v1 = vsub.f32 1.5, %v802_v0 }
 0x736   :  { %v804_v2 = vmul.f32 %v2695_v61, %v803_v1 }
 0x738   :  { %v805_v3 = vmul.f32 %v804_v2, %v798_v60 }
 0x73a   :  { %v807_v5 = vsel %vm806_vm2, %v798_v60, %v805_v3 }
 0x73b   :  { %v810_v6 = vsel %vm808_vm3, %v809_v4, %v807_v5  ;;  %vm2561_vm3 = vcmask 1040384  }
 0x73c   :  { %v811_v7 = vadd.f32 1e-05, %v810_v6 }
 0x73e   :  { %2696 = vrcp.f32 %v811_v7  ;;  %v823_v15 = vand.u32 2147483648, %v811_v7  ;;  %v821_v18 = vand.u32 2147483647, %v811_v7  ;;  %vm817_vm5 = vweird.f32 %v811_v7 }
 0x740   :  { %v824_v24 = vor.u32 1.1754944e-38, %v823_v15  ;;  %vm822_vm8 = vcmp.eq.f32.partialorder %v821_v18, 8.507059e+37 }
 0x744   :  { %v2697_v8 = vpop.eup %2696 }
 0x745   :  { %v813_v13 = vmul.f32 %v2697_v8, %v811_v7  ;;  %vm818_vm4 = vweird.f32 %v2697_v8 }
 0x746   :  { %vm819_vm7 = vmor %vm817_vm5, %vm818_vm4  ;;  %vm2563_vm5 = vcmask 1041408  }
 0x747   :  { %v814_v14 = vsub.f32 1.0, %v813_v13 }
 0x749   :  { %v815_v17 = vmul.f32 %v2697_v8, %v814_v14 }
 0x74b   :  { %v816_v23 = vadd.f32 %v2697_v8, %v815_v17 }
 0x74d   :  { %v820_v26 = vsel %vm819_vm7, %v2697_v8, %v816_v23 }
 0x74e   :  { %v825_v27 = vsel %vm822_vm8, %v824_v24, %v820_v26 }
 0x74f   :  { %v3160_v31 = vmul.f32 %v825_v27, %v780_v47 }
 0x751   :  { %2698 = vtanh.f32 %v3160_v31  ;;  %v1048_v14 = vrot.slane %v3160_v31, 7 }
 0x757   :  { %v2699_v32 = vpop.eup %2698 }
 0x758   :  { %829 = vrot.lane.b32.xlu2 %v2699_v32, %s2920_s2 }
 0x7b2   :  { %v830_v34 = vpop.permute.xlu2 %829 }
 0x7b3   :  { %v3165_v35 = vmul.f32 %v830_v34, %v3153_v22 }
 0x7b5   :  { %v834_v36 = vrot.slane %v3165_v35, 1 }
 0x7b7   :  { %835 = vrot.lane.b32.xlu2 %v834_v36, %s2922_s25 }
 0x811   :  { %v836_v39 = vpop.permute.xlu2 %835 }
 0x812   :  { %v837_v40 = vsel %vm262_vm1, %v836_v39, 0 }
 0x813   :  { %v859_v43 = vand.u32 4294901760, %v837_v40 }
 0x815   :  { %v860_v45 = vsub.f32 %v837_v40, %v859_v43  ;;  %905 = vmatmul.f32.vlgmr.msra.gmra.mxu3 %v859_v43 }
 0x816   :  { %1240 = vmatpush.msra.mxu3 %v2983_v10 }
 0x817   :  { %v861_v47 = vand.u32 4294901760, %v860_v45  ;;  %935 = vmatmul.f32.vlgmr.msrb.gmra.mxu0 %v860_v45 }
 0x818   :  { %1242 = vmatpush.msra.mxu3 %v2985_v11  ;;  %1269 = vmatpush.msrb.mxu0 %v3015_v28 }
 0x819   :  { %v862_v22 = vsub.f32 %v860_v45, %v861_v47  ;;  %962 = vmatmul.f32.vlgmr.msrb.gmra.mxu1 %v861_v47 }
 0x81a   :  { %1244 = vmatpush.msra.mxu3 %v2987_v12  ;;  %1300 = vmatpush.msrb.mxu1 %v2983_v10 }
 0x81b   :  { %v863_v49 = vand.u32 4294901760, %v862_v22  ;;  %1273 = vmatpush.msrb.mxu0 %v3018_v29 }
 0x81c   :  { %1246 = vmatpush.msra.mxu3 %v2993_v16  ;;  %1302 = vmatpush.msrb.mxu1 %v2985_v11 }
 0x81d   :  { %864 = vmatmul.f32.vlgmr.msra.gmra.mxu2 %v863_v49  ;;  %1020 = vmatmul.f32.vlgmr.msrb.gmra.mxu3 %v859_v43 }
 0x81e   :  { %1211 = vmatpush.msra.mxu2 %v2997_v19  ;;  %1304 = vmatpush.msrb.mxu1 %v2987_v12 }
 0x81f   :  { %1277 = vmatpush.msrb.mxu0 %v3021_v30  ;;  %1461 = vmatpush.msrb.mxu3 %v3036_v42 }
 0x820   :  { %1214 = vmatpush.msra.mxu2 %v3000_v20  ;;  %1306 = vmatpush.msrb.mxu1 %v2993_v16 }
 0x821   :  { %1281 = vmatpush.msrb.mxu0 %v3025_v33  ;;  %1467 = vmatpush.msrb.mxu3 %v3038_v44 }
 0x822   :  { %1217 = vmatpush.msra.mxu2 %v3003_v21 }
 0x823   :  { %1473 = vmatpush.msrb.mxu3 %v3042_v46 }
 0x824   :  { %1220 = vmatpush.msra.mxu2 %v3010_v25 }
 0x825   :  { %995 = vmatmul.f32.vlgmr.msrb.gmra.mxu2 %v859_v43  ;;  %1479 = vmatpush.msrb.mxu3 %v3047_v48 }
 0x826   :  { %1428 = vmatpush.msrb.mxu2 %v2983_v10 }
 0x828   :  { %1430 = vmatpush.msrb.mxu2 %v2985_v11 }
 0x82a   :  { %1432 = vmatpush.msrb.mxu2 %v2987_v12 }
 0x82c   :  { %1434 = vmatpush.msrb.mxu2 %v2993_v16 }
 0x894   :  { %v936_v52 = vpop.f32.mrf.mxu0 }
 0x896   :  { %v963_v54 = vpop.f32.mrf.mxu1 }
 0x898   :  { %v906_v50 = vpop.f32.mrf.mxu3 }
 0x8a0   :  { %v865_v37 = vpop.f32.mrf.mxu2  ;;  %v1021_v58 = vpop.f32.mrf.mxu3 }
 0x8a1   :  { %v907_v51 = vadd.f32 %v906_v50, %v865_v37 }
 0x8a3   :  { %v937_v53 = vadd.f32 %v936_v52, %v907_v51 }
 0x8a5   :  { %v964_v55 = vadd.f32 %v963_v54, %v937_v53 }
 0x8a8   :  { %v996_v56 = vpop.f32.mrf.mxu2 }
 0x8a9   :  { %v997_v57 = vadd.f32 %v996_v56, %v964_v55 }
 0x8ab   :  { %v1022_v59 = vadd.f32 %v1021_v58, %v997_v57 }
 0x8ad   :  { %v1025_v60 = vrot.slane %v1022_v59, 6 }
 0x8af   :  { %v1027_v61 = vadd.f32 %v1025_v60, %v3107_v9 }
 0x8b1   :  { %v2629_v62 = vmul.f32 -1.442695, %v1027_v61 }
 0x8b3   :  { %2700 = vpow2.f32 %v2629_v62 }
 0x8b9   :  { %v2701_v63 = vpop.eup %2700 }
 0x8ba   :  { %v1031_v0 = vadd.f32 1.0, %v2701_v63 }
 0x8bc   :  { %2702 = vrcp.f32 %v1031_v0  ;;  %v1043_v4 = vand.u32 2147483648, %v1031_v0  ;;  %v1041_v6 = vand.u32 2147483647, %v1031_v0  ;;  %vm1037_vm10 = vweird.f32 %v1031_v0 }
 0x8be   :  { %v1044_v8 = vor.u32 1.1754944e-38, %v1043_v4  ;;  %vm1042_vm12 = vcmp.eq.f32.partialorder %v1041_v6, 8.507059e+37 }
 0x8c2   :  { %v2703_v1 = vpop.eup %2702 }
 0x8c3   :  { %v1033_v2 = vmul.f32 %v2703_v1, %v1031_v0  ;;  %vm1038_vm9 = vweird.f32 %v2703_v1 }
 0x8c4   :  { %vm1039_vm11 = vmor %vm1037_vm10, %vm1038_vm9 }
 0x8c5   :  { %v1034_v3 = vsub.f32 1.0, %v1033_v2 }
 0x8c7   :  { %v1035_v5 = vmul.f32 %v2703_v1, %v1034_v3 }
 0x8c9   :  { %v1036_v7 = vadd.f32 %v2703_v1, %v1035_v5 }
 0x8cb   :  { %v1040_v13 = vsel %vm1039_vm11, %v2703_v1, %v1036_v7 }
 0x8cc   :  { %v3196_v15 = vsel %vm1042_vm12, %v1044_v8, %v1040_v13 }
 0x8cd   :  { %v1050_v17 = vmul.f32 %v1048_v14, %v3196_v15 }
 0x8cf   :  { %v1052_v18 = vrot.slane %v1050_v17, 2 }
 0x8d1   :  { %1053 = vrot.lane.b32.xlu2 %v1052_v18, %s2921_s5 }
 0x92b   :  { %v1054_v23 = vpop.permute.xlu2 %1053 }
 0x92c   :  { %v1056_v24 = vsel %vm481_vm6, %v1054_v23, 0.0 }
 0x92d   :  { %1057 = vadd.xlane.f32.xlu2 %v1056_v24 }
 0x9a0   :  { %v1058_v26 = vpop.xlane.xlu2 %1057 }
 0x9a1   :  { %v1059_v27 = vrot.slane %v1058_v26, 4 }
 0x9a3   :  { %v1060_v32 = vadd.f32 %v1059_v27, %v1058_v26 }
 0x9a5   :  { %v1061_v34 = vrot.slane %v1060_v32, 2 }
 0x9a7   :  { %v1062_v36 = vadd.f32 %v1061_v34, %v1060_v32  ;;  %v2580_v34 = vsel %vm2561_vm3, %v3117_v38, %v3160_v31 }
 0x9a9   :  { %v1063_v39 = vrot.slane %v1062_v36, 1 }
 0x9ab   :  { %v1064_v40 = vadd.f32 %v1063_v39, %v1062_v36 }
 0x9ad   :  { %2643 = vpush %v1064_v40 }
 0x9de   :  { %s2644_s28 = spop %2643 }
 0x9df   :  { %v1066_v43 = vstv %s2644_s28 }
 0x9e0   :  { %v1067_v45 = vmul.f32 0.03125, %v1066_v43 }
 0x9e2   :  { %v1068_v47 = vsub.f32 %v1050_v17, %v1067_v45  ;;  %v2562_v45 = vsel %vm2561_vm3, %v3122_v41, %v3165_v35 }
 0x9e4   :  { %v1069_v22 = vmul.f32 %v1068_v47, %v1068_v47 }
 0x9e6   :  { %v1071_v49 = vrot.slane %v1069_v22, 2 }
 0x9e8   :  { %1072 = vrot.lane.b32.xlu0 %v1071_v49, %s2921_s5 }
 0xa5a   :  { %v1073_v50 = vpop.permute.xlu0 %1072 }
 0xa5b   :  { %v1075_v37 = vsel %vm481_vm6, %v1073_v50, 0.0 }
 0xa5c   :  { %1076 = vadd.xlane.f32.xlu1 %v1075_v37 }
 0xacf   :  { %v1077_v51 = vpop.xlane.xlu1 %1076 }
 0xad0   :  { %v1078_v52 = vrot.slane %v1077_v51, 4 }
 0xad2   :  { %v1079_v53 = vadd.f32 %v1078_v52, %v1077_v51 }
 0xad4   :  { %v1080_v54 = vrot.slane %v1079_v53, 2 }
 0xad6   :  { %v1081_v55 = vadd.f32 %v1080_v54, %v1079_v53 }
 0xad8   :  { %v1082_v56 = vrot.slane %v1081_v55, 1 }
 0xada   :  { %v1083_v57 = vadd.f32 %v1082_v56, %v1081_v55 }
 0xadc   :  { %2645 = vpush %v1083_v57 }
 0xb0d   :  { %s2646_s29 = spop %2645 }
 0xb0e   :  { %v1085_v58 = vstv %s2646_s29 }
 0xb0f   :  { %v1086_v59 = vmul.f32 0.032258064, %v1085_v58 }
 0xb11   :  { %2704 = vrsqrt.f32 %v1086_v59  ;;  %vm1094_vm13 = vcmp.eq.f32.partialorder %v1086_v59, inf  ;;  %v1097_v3 = vand.u32 2147483648, %v1086_v59  ;;  %vm1096_vm14 = vcmp.eq.f32.partialorder %v1086_v59, 0.0 }
 0xb17   :  { %v2705_v60 = vpop.eup %2704 }
 0xb18   :  { %v1088_v61 = vmul.f32 %v2705_v60, %v1086_v59 }
 0xb1a   :  { %v1089_v62 = vmul.f32 %v2705_v60, %v1088_v61 }
 0xb1c   :  { %v1090_v63 = vmul.f32 0.5, %v1089_v62 }
 0xb1e   :  { %v1091_v0 = vsub.f32 1.5, %v1090_v63 }
 0xb20   :  { %v1092_v1 = vmul.f32 %v2705_v60, %v1091_v0 }
 0xb22   :  { %v1093_v2 = vmul.f32 %v1092_v1, %v1086_v59 }
 0xb24   :  { %v1095_v4 = vsel %vm1094_vm13, %v1086_v59, %v1093_v2 }
 0xb25   :  { %v1098_v5 = vsel %vm1096_vm14, %v1097_v3, %v1095_v4 }
 0xb26   :  { %v1099_v6 = vadd.f32 1e-05, %v1098_v5 }
 0xb28   :  { %2706 = vrcp.f32 %v1099_v6  ;;  %v1111_v14 = vand.u32 2147483648, %v1099_v6  ;;  %v1109_v18 = vand.u32 2147483647, %v1099_v6  ;;  %vm1105_vm0 = vweird.f32 %v1099_v6 }
 0xb2a   :  { %v1112_v24 = vor.u32 1.1754944e-38, %v1111_v14  ;;  %vm1110_vm4 = vcmp.eq.f32.partialorder %v1109_v18, 8.507059e+37 }
 0xb2e   :  { %v2707_v7 = vpop.eup %2706 }
 0xb2f   :  { %v1101_v8 = vmul.f32 %v2707_v7, %v1099_v6  ;;  %vm1106_vm15 = vweird.f32 %v2707_v7 }
 0xb30   :  { %vm1107_vm2 = vmor %vm1105_vm0, %vm1106_vm15 }
 0xb31   :  { %v1102_v13 = vsub.f32 1.0, %v1101_v8 }
 0xb33   :  { %v1103_v17 = vmul.f32 %v2707_v7, %v1102_v13 }
 0xb35   :  { %v1104_v23 = vadd.f32 %v2707_v7, %v1103_v17 }
 0xb37   :  { %v1108_v26 = vsel %vm1107_vm2, %v2707_v7, %v1104_v23  ;;  %vm2565_vm2 = vcmask 1042432  }
 0xb38   :  { %v1113_v27 = vsel %vm1110_vm4, %v1112_v24, %v1108_v26 }
 0xb39   :  { %v3203_v32 = vmul.f32 %v1113_v27, %v1068_v47 }
 0xb3b   :  { %2708 = vtanh.f32 %v3203_v32  ;;  %v3209_v36 = vsel %vm2563_vm5, %v2580_v34, %v3203_v32  ;;  %v1336_v17 = vrot.slane %v3203_v32, 7 }
 0xb41   :  { %v2709_v39 = vpop.eup %2708 }
 0xb42   :  { %1117 = vrot.lane.b32.xlu1 %v2709_v39, %s2920_s2 }
 0xbb4   :  { %v1118_v40 = vpop.permute.xlu1 %1117 }
 0xbb5   :  { %v1120_v43 = vmul.f32 %v1118_v40, %v3196_v15 }
 0xbb7   :  { %v1122_v22 = vrot.slane %v1120_v43, 2  ;;  %v3215_v47 = vsel %vm2563_vm5, %v2562_v45, %v1120_v43 }
 0xbb9   :  { %1123 = vrot.lane.b32.xlu0 %v1122_v22, %s2922_s25 }
 0xc2b   :  { %v1124_v38 = vpop.permute.xlu0 %1123 }
 0xc2c   :  { %v1125_v31 = vsel %vm262_vm1, %v1124_v38, 0 }
 0xc2d   :  { %v1147_v49 = vand.u32 4294901760, %v1125_v31 }
 0xc2f   :  { %v1148_v50 = vsub.f32 %v1125_v31, %v1147_v49  ;;  %1193 = vmatmul.f32.vlgmr.msra.gmra.mxu1 %v1147_v49 }
 0xc30   :  { %1528 = vmatpush.msra.mxu1 %v2983_v10 }
 0xc31   :  { %v1149_v37 = vand.u32 4294901760, %v1148_v50  ;;  %1223 = vmatmul.f32.vlgmr.msra.gmra.mxu2 %v1148_v50 }
 0xc32   :  { %1530 = vmatpush.msra.mxu1 %v2985_v11  ;;  %1557 = vmatpush.msra.mxu2 %v3015_v28 }
 0xc33   :  { %v1150_v41 = vsub.f32 %v1148_v50, %v1149_v37  ;;  %1250 = vmatmul.f32.vlgmr.msra.gmra.mxu3 %v1149_v37 }
 0xc34   :  { %1532 = vmatpush.msra.mxu1 %v2987_v12  ;;  %1588 = vmatpush.msra.mxu3 %v2983_v10 }
 0xc35   :  { %v1151_v35 = vand.u32 4294901760, %v1150_v41  ;;  %1561 = vmatpush.msra.mxu2 %v3018_v29 }
 0xc36   :  { %1534 = vmatpush.msra.mxu1 %v2993_v16  ;;  %1590 = vmatpush.msra.mxu3 %v2985_v11 }
 0xc37   :  { %1152 = vmatmul.f32.vlgmr.msra.gmra.mxu0 %v1151_v35  ;;  %1308 = vmatmul.f32.vlgmr.msrb.gmra.mxu1 %v1147_v49 }
 0xc38   :  { %1499 = vmatpush.msra.mxu0 %v2997_v19  ;;  %1592 = vmatpush.msra.mxu3 %v2987_v12 }
 0xc39   :  { %1565 = vmatpush.msra.mxu2 %v3021_v30  ;;  %1749 = vmatpush.msrb.mxu1 %v3036_v42 }
 0xc3a   :  { %1502 = vmatpush.msra.mxu0 %v3000_v20  ;;  %1594 = vmatpush.msra.mxu3 %v2993_v16 }
 0xc3b   :  { %1569 = vmatpush.msra.mxu2 %v3025_v33  ;;  %1755 = vmatpush.msrb.mxu1 %v3038_v44 }
 0xc3c   :  { %1505 = vmatpush.msra.mxu0 %v3003_v21 }
 0xc3d   :  { %1761 = vmatpush.msrb.mxu1 %v3042_v46 }
 0xc3e   :  { %1508 = vmatpush.msra.mxu0 %v3010_v25 }
 0xc3f   :  { %1283 = vmatmul.f32.vlgmr.msrb.gmra.mxu0 %v1147_v49  ;;  %1767 = vmatpush.msrb.mxu1 %v3047_v48 }
 0xc40   :  { %1716 = vmatpush.msrb.mxu0 %v2983_v10 }
 0xc42   :  { %1718 = vmatpush.msrb.mxu0 %v2985_v11 }
 0xc44   :  { %1720 = vmatpush.msrb.mxu0 %v2987_v12 }
 0xc46   :  { %1722 = vmatpush.msrb.mxu0 %v2993_v16 }
 0xcac   :  { %v1194_v15 = vpop.f32.mrf.mxu1 }
 0xcb4   :  { %v1153_v51 = vpop.f32.mrf.mxu0  ;;  %v1224_v53 = vpop.f32.mrf.mxu2 }
 0xcb5   :  { %v1195_v52 = vadd.f32 %v1194_v15, %v1153_v51  ;;  %v1309_v59 = vpop.f32.mrf.mxu1 }
 0xcb6   :  { %v1251_v55 = vpop.f32.mrf.mxu3 }
 0xcb7   :  { %v1225_v54 = vadd.f32 %v1224_v53, %v1195_v52 }
 0xcb9   :  { %v1252_v56 = vadd.f32 %v1251_v55, %v1225_v54 }
 0xcbc   :  { %v1284_v57 = vpop.f32.mrf.mxu0 }
 0xcbd   :  { %v1285_v58 = vadd.f32 %v1284_v57, %v1252_v56 }
 0xcbf   :  { %v1310_v60 = vadd.f32 %v1309_v59, %v1285_v58 }
 0xcc1   :  { %v1313_v61 = vrot.slane %v1310_v60, 5 }
 0xcc3   :  { %v1315_v62 = vadd.f32 %v1313_v61, %v3107_v9 }
 0xcc5   :  { %v2630_v63 = vmul.f32 -1.442695, %v1315_v62 }
 0xcc7   :  { %2710 = vpow2.f32 %v2630_v63 }
 0xccd   :  { %v2711_v0 = vpop.eup %2710 }
 0xcce   :  { %v1319_v1 = vadd.f32 1.0, %v2711_v0 }
 0xcd0   :  { %2712 = vrcp.f32 %v1319_v1  ;;  %v1331_v5 = vand.u32 2147483648, %v1319_v1  ;;  %v1329_v7 = vand.u32 2147483647, %v1319_v1  ;;  %vm1325_vm8 = vweird.f32 %v1319_v1 }
 0xcd2   :  { %v1332_v13 = vor.u32 1.1754944e-38, %v1331_v5  ;;  %vm1330_vm10 = vcmp.eq.f32.partialorder %v1329_v7, 8.507059e+37 }
 0xcd6   :  { %v2713_v2 = vpop.eup %2712 }
 0xcd7   :  { %v1321_v3 = vmul.f32 %v2713_v2, %v1319_v1  ;;  %vm1326_vm7 = vweird.f32 %v2713_v2 }
 0xcd8   :  { %vm1327_vm9 = vmor %vm1325_vm8, %vm1326_vm7 }
 0xcd9   :  { %v1322_v4 = vsub.f32 1.0, %v1321_v3 }
 0xcdb   :  { %v1323_v6 = vmul.f32 %v2713_v2, %v1322_v4 }
 0xcdd   :  { %v1324_v8 = vadd.f32 %v2713_v2, %v1323_v6 }
 0xcdf   :  { %v1328_v14 = vsel %vm1327_vm9, %v2713_v2, %v1324_v8 }
 0xce0   :  { %v3245_v18 = vsel %vm1330_vm10, %v1332_v13, %v1328_v14 }
 0xce1   :  { %v1338_v23 = vmul.f32 %v1336_v17, %v3245_v18 }
 0xce3   :  { %v1340_v24 = vrot.slane %v1338_v23, 3 }
 0xce5   :  { %1341 = vrot.lane.b32.xlu0 %v1340_v24, %s2921_s5 }
 0xd57   :  { %v1342_v26 = vpop.permute.xlu0 %1341 }
 0xd58   :  { %v1344_v27 = vsel %vm481_vm6, %v1342_v26, 0.0 }
 0xd59   :  { %1345 = vadd.xlane.f32.xlu2 %v1344_v27 }
 0xdcc   :  { %v1346_v34 = vpop.xlane.xlu2 %1345 }
 0xdcd   :  { %v1347_v39 = vrot.slane %v1346_v34, 4 }
 0xdcf   :  { %v1348_v40 = vadd.f32 %v1347_v39, %v1346_v34 }
 0xdd1   :  { %v1349_v43 = vrot.slane %v1348_v40, 2 }
 0xdd3   :  { %v1350_v45 = vadd.f32 %v1349_v43, %v1348_v40 }
 0xdd5   :  { %v1351_v22 = vrot.slane %v1350_v45, 1 }
 0xdd7   :  { %v1352_v38 = vadd.f32 %v1351_v22, %v1350_v45 }
 0xdd9   :  { %2647 = vpush %v1352_v38 }
 0xe0a   :  { %s2648_s30 = spop %2647 }
 0xe0b   :  { %v1354_v32 = vstv %s2648_s30 }
 0xe0c   :  { %v1355_v31 = vmul.f32 0.03125, %v1354_v32 }
 0xe0e   :  { %v1356_v49 = vsub.f32 %v1338_v23, %v1355_v31 }
 0xe10   :  { %v1357_v50 = vmul.f32 %v1356_v49, %v1356_v49 }
 0xe12   :  { %v1359_v37 = vrot.slane %v1357_v50, 3 }
 0xe14   :  { %1360 = vrot.lane.b32.xlu1 %v1359_v37, %s2921_s5 }
 0xe86   :  { %v1361_v41 = vpop.permute.xlu1 %1360 }
 0xe87   :  { %v1363_v35 = vsel %vm481_vm6, %v1361_v41, 0.0 }
 0xe88   :  { %1364 = vadd.xlane.f32.xlu0 %v1363_v35 }
 0xefb   :  { %v1365_v15 = vpop.xlane.xlu0 %1364 }
 0xefc   :  { %v1366_v51 = vrot.slane %v1365_v15, 4 }
 0xefe   :  { %v1367_v52 = vadd.f32 %v1366_v51, %v1365_v15 }
 0xf00   :  { %v1368_v53 = vrot.slane %v1367_v52, 2 }
 0xf02   :  { %v1369_v54 = vadd.f32 %v1368_v53, %v1367_v52 }
 0xf04   :  { %v1370_v55 = vrot.slane %v1369_v54, 1 }
 0xf06   :  { %v1371_v56 = vadd.f32 %v1370_v55, %v1369_v54 }
 0xf08   :  { %2649 = vpush %v1371_v56 }
 0xf39   :  { %s2650_s8 = spop %2649 }
 0xf3a   :  { %v1373_v57 = vstv %s2650_s8 }
 0xf3b   :  { %v1374_v58 = vmul.f32 0.032258064, %v1373_v57 }
 0xf3d   :  { %2714 = vrsqrt.f32 %v1374_v58  ;;  %vm1382_vm11 = vcmp.eq.f32.partialorder %v1374_v58, inf  ;;  %v1385_v2 = vand.u32 2147483648, %v1374_v58  ;;  %vm1384_vm12 = vcmp.eq.f32.partialorder %v1374_v58, 0.0 }
 0xf43   :  { %v2715_v59 = vpop.eup %2714 }
 0xf44   :  { %v1376_v60 = vmul.f32 %v2715_v59, %v1374_v58 }
 0xf46   :  { %v1377_v61 = vmul.f32 %v2715_v59, %v1376_v60 }
 0xf48   :  { %v1378_v62 = vmul.f32 0.5, %v1377_v61 }
 0xf4a   :  { %v1379_v63 = vsub.f32 1.5, %v1378_v62 }
 0xf4c   :  { %v1380_v0 = vmul.f32 %v2715_v59, %v1379_v63 }
 0xf4e   :  { %v1381_v1 = vmul.f32 %v1380_v0, %v1374_v58 }
 0xf50   :  { %v1383_v3 = vsel %vm1382_vm11, %v1374_v58, %v1381_v1 }
 0xf51   :  { %v1386_v4 = vsel %vm1384_vm12, %v1385_v2, %v1383_v3 }
 0xf52   :  { %v1387_v5 = vadd.f32 1e-05, %v1386_v4 }
 0xf54   :  { %2716 = vrcp.f32 %v1387_v5  ;;  %v1399_v13 = vand.u32 2147483648, %v1387_v5  ;;  %v1397_v17 = vand.u32 2147483647, %v1387_v5  ;;  %vm1393_vm14 = vweird.f32 %v1387_v5 }
 0xf56   :  { %v1400_v24 = vor.u32 1.1754944e-38, %v1399_v13  ;;  %vm1398_vm0 = vcmp.eq.f32.partialorder %v1397_v17, 8.507059e+37 }
 0xf5a   :  { %v2717_v6 = vpop.eup %2716 }
 0xf5b   :  { %v1389_v7 = vmul.f32 %v2717_v6, %v1387_v5  ;;  %vm1394_vm13 = vweird.f32 %v2717_v6 }
 0xf5c   :  { %vm1395_vm15 = vmor %vm1393_vm14, %vm1394_vm13  ;;  %vm2567_vm14 = vcmask 1043456  }
 0xf5d   :  { %v1390_v8 = vsub.f32 1.0, %v1389_v7 }
 0xf5f   :  { %v1391_v14 = vmul.f32 %v2717_v6, %v1390_v8 }
 0xf61   :  { %v1392_v23 = vadd.f32 %v2717_v6, %v1391_v14 }
 0xf63   :  { %v1396_v26 = vsel %vm1395_vm15, %v2717_v6, %v1392_v23 }
 0xf64   :  { %v1401_v27 = vsel %vm1398_vm0, %v1400_v24, %v1396_v26 }
 0xf65   :  { %v3252_v34 = vmul.f32 %v1401_v27, %v1356_v49 }
 0xf67   :  { %2718 = vtanh.f32 %v3252_v34  ;;  %v3257_v39 = vsel %vm2565_vm2, %v3209_v36, %v3252_v34  ;;  %v1624_v8 = vrot.slane %v3252_v34, 7 }
 0xf6d   :  { %v2719_v40 = vpop.eup %2718 }
 0xf6e   :  { %1405 = vrot.lane.b32.xlu2 %v2719_v40, %s2920_s2 }
 0xfc8   :  { %v1406_v43 = vpop.permute.xlu2 %1405 }
 0xfc9   :  { %v1408_v45 = vmul.f32 %v1406_v43, %v3245_v18 }
 0xfcb   :  { %v1410_v22 = vrot.slane %v1408_v45, 3  ;;  %v3262_v38 = vsel %vm2565_vm2, %v3215_v47, %v1408_v45 }
 0xfcd   :  { %1411 = vrot.lane.b32.xlu1 %v1410_v22, %s2922_s25 }
0x103f   :  { %v1412_v32 = vpop.permute.xlu1 %1411 }
0x1040   :  { %v1413_v31 = vsel %vm262_vm1, %v1412_v32, 0 }
0x1041   :  { %v1435_v49 = vand.u32 4294901760, %v1413_v31 }
0x1043   :  { %v1436_v50 = vsub.f32 %v1413_v31, %v1435_v49  ;;  %1481 = vmatmul.f32.vlgmr.msrb.gmra.mxu3 %v1435_v49 }
0x1044   :  { %1816 = vmatpush.msrb.mxu3 %v2983_v10 }
0x1045   :  { %v1437_v36 = vand.u32 4294901760, %v1436_v50  ;;  %1511 = vmatmul.f32.vlgmr.msra.gmra.mxu0 %v1436_v50 }
0x1046   :  { %1818 = vmatpush.msrb.mxu3 %v2985_v11  ;;  %1845 = vmatpush.msra.mxu0 %v3015_v28 }
0x1047   :  { %v1438_v18 = vsub.f32 %v1436_v50, %v1437_v36  ;;  %1538 = vmatmul.f32.vlgmr.msra.gmra.mxu1 %v1437_v36 }
0x1048   :  { %1820 = vmatpush.msrb.mxu3 %v2987_v12  ;;  %1876 = vmatpush.msra.mxu1 %v2983_v10 }
0x1049   :  { %v1439_v47 = vand.u32 4294901760, %v1438_v18  ;;  %1849 = vmatpush.msra.mxu0 %v3018_v29 }
0x104a   :  { %1822 = vmatpush.msrb.mxu3 %v2993_v16  ;;  %1878 = vmatpush.msra.mxu1 %v2985_v11 }
0x104b   :  { %1440 = vmatmul.f32.vlgmr.msrb.gmra.mxu2 %v1439_v47  ;;  %1596 = vmatmul.f32.vlgmr.msra.gmra.mxu3 %v1435_v49 }
0x104c   :  { %1787 = vmatpush.msrb.mxu2 %v2997_v19  ;;  %1880 = vmatpush.msra.mxu1 %v2987_v12 }
0x104d   :  { %1853 = vmatpush.msra.mxu0 %v3021_v30  ;;  %2037 = vmatpush.msra.mxu3 %v3036_v42 }
0x104e   :  { %1790 = vmatpush.msrb.mxu2 %v3000_v20  ;;  %1882 = vmatpush.msra.mxu1 %v2993_v16 }
0x104f   :  { %1857 = vmatpush.msra.mxu0 %v3025_v33  ;;  %2043 = vmatpush.msra.mxu3 %v3038_v44 }
0x1050   :  { %1793 = vmatpush.msrb.mxu2 %v3003_v21 }
0x1051   :  { %2049 = vmatpush.msra.mxu3 %v3042_v46 }
0x1052   :  { %1796 = vmatpush.msrb.mxu2 %v3010_v25 }
0x1053   :  { %1571 = vmatmul.f32.vlgmr.msra.gmra.mxu2 %v1435_v49  ;;  %2055 = vmatpush.msra.mxu3 %v3047_v48 }
0x1054   :  { %2004 = vmatpush.msra.mxu2 %v2983_v10 }
0x1056   :  { %2006 = vmatpush.msra.mxu2 %v2985_v11 }
0x1058   :  { %2008 = vmatpush.msra.mxu2 %v2987_v12 }
0x105a   :  { %2010 = vmatpush.msra.mxu2 %v2993_v16 }
0x10c2   :  { %v1512_v15 = vpop.f32.mrf.mxu0 }
0x10c4   :  { %v1539_v52 = vpop.f32.mrf.mxu1 }
0x10c6   :  { %v1482_v37 = vpop.f32.mrf.mxu3 }
0x10ce   :  { %v1441_v41 = vpop.f32.mrf.mxu2  ;;  %v1597_v56 = vpop.f32.mrf.mxu3 }
0x10cf   :  { %v1483_v35 = vadd.f32 %v1482_v37, %v1441_v41 }
0x10d1   :  { %v1513_v51 = vadd.f32 %v1512_v15, %v1483_v35 }
0x10d3   :  { %v1540_v53 = vadd.f32 %v1539_v52, %v1513_v51 }
0x10d6   :  { %v1572_v54 = vpop.f32.mrf.mxu2 }
0x10d7   :  { %v1573_v55 = vadd.f32 %v1572_v54, %v1540_v53 }
0x10d9   :  { %v1598_v57 = vadd.f32 %v1597_v56, %v1573_v55 }
0x10db   :  { %v1601_v58 = vrot.slane %v1598_v57, 4 }
0x10dd   :  { %v1603_v59 = vadd.f32 %v1601_v58, %v3107_v9 }
0x10df   :  { %v2631_v60 = vmul.f32 -1.442695, %v1603_v59 }
0x10e1   :  { %2720 = vpow2.f32 %v2631_v60 }
0x10e7   :  { %v2721_v61 = vpop.eup %2720 }
0x10e8   :  { %v1607_v62 = vadd.f32 1.0, %v2721_v61 }
0x10ea   :  { %2722 = vrcp.f32 %v1607_v62  ;;  %v1619_v2 = vand.u32 2147483648, %v1607_v62  ;;  %v1617_v4 = vand.u32 2147483647, %v1607_v62  ;;  %vm1613_vm4 = vweird.f32 %v1607_v62 }
0x10ec   :  { %v1620_v6 = vor.u32 1.1754944e-38, %v1619_v2  ;;  %vm1618_vm7 = vcmp.eq.f32.partialorder %v1617_v4, 8.507059e+37 }
0x10f0   :  { %v2723_v63 = vpop.eup %2722 }
0x10f1   :  { %v1609_v0 = vmul.f32 %v2723_v63, %v1607_v62  ;;  %vm1614_vm3 = vweird.f32 %v2723_v63 }
0x10f2   :  { %vm1615_vm5 = vmor %vm1613_vm4, %vm1614_vm3 }
0x10f3   :  { %v1610_v1 = vsub.f32 1.0, %v1609_v0 }
0x10f5   :  { %v1611_v3 = vmul.f32 %v2723_v63, %v1610_v1 }
0x10f7   :  { %v1612_v5 = vadd.f32 %v2723_v63, %v1611_v3 }
0x10f9   :  { %v1616_v7 = vsel %vm1615_vm5, %v2723_v63, %v1612_v5 }
0x10fa   :  { %v3292_v13 = vsel %vm1618_vm7, %v1620_v6, %v1616_v7 }
0x10fb   :  { %v1626_v14 = vmul.f32 %v1624_v8, %v3292_v13 }
0x10fd   :  { %v1628_v17 = vrot.slane %v1626_v14, 4 }
0x10ff   :  { %1629 = vrot.lane.b32.xlu1 %v1628_v17, %s2921_s5 }
0x1171   :  { %v1630_v23 = vpop.permute.xlu1 %1629 }
0x1172   :  { %v1632_v24 = vsel %vm481_vm6, %v1630_v23, 0.0 }
0x1173   :  { %1633 = vadd.xlane.f32.xlu1 %v1632_v24 }
0x11e6   :  { %v1634_v26 = vpop.xlane.xlu1 %1633 }
0x11e7   :  { %v1635_v27 = vrot.slane %v1634_v26, 4 }
0x11e9   :  { %v1636_v40 = vadd.f32 %v1635_v27, %v1634_v26 }
0x11eb   :  { %v1637_v43 = vrot.slane %v1636_v40, 2 }
0x11ed   :  { %v1638_v45 = vadd.f32 %v1637_v43, %v1636_v40 }
0x11ef   :  { %v1639_v22 = vrot.slane %v1638_v45, 1 }
0x11f1   :  { %v1640_v32 = vadd.f32 %v1639_v22, %v1638_v45 }
0x11f3   :  { %2651 = vpush %v1640_v32 }
0x1224   :  { %s2652_s9 = spop %2651 }
0x1225   :  { %v1642_v34 = vstv %s2652_s9 }
0x1226   :  { %v1643_v31 = vmul.f32 0.03125, %v1642_v34 }
0x1228   :  { %v1644_v49 = vsub.f32 %v1626_v14, %v1643_v31 }
0x122a   :  { %v1645_v50 = vmul.f32 %v1644_v49, %v1644_v49 }
0x122c   :  { %v1647_v36 = vrot.slane %v1645_v50, 4 }
0x122e   :  { %1648 = vrot.lane.b32.xlu2 %v1647_v36, %s2921_s5 }
0x1288   :  { %v1649_v18 = vpop.permute.xlu2 %1648 }
0x1289   :  { %v1651_v47 = vsel %vm481_vm6, %v1649_v18, 0.0 }
0x128a   :  { %1652 = vadd.xlane.f32.xlu2 %v1651_v47 }
0x12fd   :  { %v1653_v37 = vpop.xlane.xlu2 %1652 }
0x12fe   :  { %v1654_v41 = vrot.slane %v1653_v37, 4 }
0x1300   :  { %v1655_v35 = vadd.f32 %v1654_v41, %v1653_v37 }
0x1302   :  { %v1656_v15 = vrot.slane %v1655_v35, 2 }
0x1304   :  { %v1657_v51 = vadd.f32 %v1656_v15, %v1655_v35 }
0x1306   :  { %v1658_v52 = vrot.slane %v1657_v51, 1 }
0x1308   :  { %v1659_v53 = vadd.f32 %v1658_v52, %v1657_v51 }
0x130a   :  { %2653 = vpush %v1659_v53 }
0x133b   :  { %s2654_s10 = spop %2653 }
0x133c   :  { %v1661_v54 = vstv %s2654_s10 }
0x133d   :  { %v1662_v55 = vmul.f32 0.032258064, %v1661_v54 }
0x133f   :  { %2724 = vrsqrt.f32 %v1662_v55  ;;  %vm1670_vm8 = vcmp.eq.f32.partialorder %v1662_v55, inf  ;;  %v1673_v63 = vand.u32 2147483648, %v1662_v55  ;;  %vm1672_vm9 = vcmp.eq.f32.partialorder %v1662_v55, 0.0 }
0x1345   :  { %v2725_v56 = vpop.eup %2724 }
0x1346   :  { %v1664_v57 = vmul.f32 %v2725_v56, %v1662_v55 }
0x1348   :  { %v1665_v58 = vmul.f32 %v2725_v56, %v1664_v57 }
0x134a   :  { %v1666_v59 = vmul.f32 0.5, %v1665_v58 }
0x134c   :  { %v1667_v60 = vsub.f32 1.5, %v1666_v59 }
0x134e   :  { %v1668_v61 = vmul.f32 %v2725_v56, %v1667_v60 }
0x1350   :  { %v1669_v62 = vmul.f32 %v1668_v61, %v1662_v55 }
0x1352   :  { %v1671_v0 = vsel %vm1670_vm8, %v1662_v55, %v1669_v62 }
0x1353   :  { %v1674_v1 = vsel %vm1672_vm9, %v1673_v63, %v1671_v0 }
0x1354   :  { %v1675_v2 = vadd.f32 1e-05, %v1674_v1 }
0x1356   :  { %2726 = vrcp.f32 %v1675_v2  ;;  %v1687_v6 = vand.u32 2147483648, %v1675_v2  ;;  %v1685_v8 = vand.u32 2147483647, %v1675_v2  ;;  %vm1681_vm11 = vweird.f32 %v1675_v2 }
0x1358   :  { %v1688_v17 = vor.u32 1.1754944e-38, %v1687_v6  ;;  %vm1686_vm13 = vcmp.eq.f32.partialorder %v1685_v8, 8.507059e+37 }
0x135c   :  { %v2727_v3 = vpop.eup %2726 }
0x135d   :  { %v1677_v4 = vmul.f32 %v2727_v3, %v1675_v2  ;;  %vm1682_vm10 = vweird.f32 %v2727_v3 }
0x135e   :  { %vm1683_vm12 = vmor %vm1681_vm11, %vm1682_vm10  ;;  %vm2569_vm11 = vcmask 1044480  }
0x135f   :  { %v1678_v5 = vsub.f32 1.0, %v1677_v4 }
0x1361   :  { %v1679_v7 = vmul.f32 %v2727_v3, %v1678_v5 }
0x1363   :  { %v1680_v14 = vadd.f32 %v2727_v3, %v1679_v7 }
0x1365   :  { %v1684_v23 = vsel %vm1683_vm12, %v2727_v3, %v1680_v14 }
0x1366   :  { %v1689_v24 = vsel %vm1686_vm13, %v1688_v17, %v1684_v23 }
0x1367   :  { %v3299_v26 = vmul.f32 %v1689_v24, %v1644_v49 }
0x1369   :  { %2728 = vtanh.f32 %v3299_v26  ;;  %v3304_v27 = vsel %vm2567_vm14, %v3257_v39, %v3299_v26  ;;  %v1912_v1 = vrot.slane %v3299_v26, 7 }
0x136f   :  { %v2729_v40 = vpop.eup %2728 }
0x1370   :  { %1693 = vrot.lane.b32.xlu0 %v2729_v40, %s2920_s2 }
0x13e2   :  { %v1694_v43 = vpop.permute.xlu0 %1693 }
0x13e3   :  { %v1696_v45 = vmul.f32 %v1694_v43, %v3292_v13 }
0x13e5   :  { %v1698_v22 = vrot.slane %v1696_v45, 4  ;;  %v3309_v32 = vsel %vm2567_vm14, %v3262_v38, %v1696_v45 }
0x13e7   :  { %1699 = vrot.lane.b32.xlu0 %v1698_v22, %s2922_s25 }
0x1459   :  { %v1700_v34 = vpop.permute.xlu0 %1699 }
0x145a   :  { %v1701_v31 = vsel %vm262_vm1, %v1700_v34, 0 }
0x145b   :  { %v1723_v49 = vand.u32 4294901760, %v1701_v31 }
0x145d   :  { %v1724_v50 = vsub.f32 %v1701_v31, %v1723_v49  ;;  %1769 = vmatmul.f32.vlgmr.msrb.gmra.mxu1 %v1723_v49 }
0x145e   :  { %2104 = vmatpush.msrb.mxu1 %v2983_v10 }
0x145f   :  { %v1725_v39 = vand.u32 4294901760, %v1724_v50  ;;  %1799 = vmatmul.f32.vlgmr.msrb.gmra.mxu2 %v1724_v50 }
0x1460   :  { %2106 = vmatpush.msrb.mxu1 %v2985_v11  ;;  %2133 = vmatpush.msrb.mxu2 %v3015_v28 }
0x1461   :  { %v1726_v13 = vsub.f32 %v1724_v50, %v1725_v39  ;;  %1826 = vmatmul.f32.vlgmr.msrb.gmra.mxu3 %v1725_v39 }
0x1462   :  { %2108 = vmatpush.msrb.mxu1 %v2987_v12  ;;  %2164 = vmatpush.msrb.mxu3 %v2983_v10 }
0x1463   :  { %v1727_v38 = vand.u32 4294901760, %v1726_v13  ;;  %2137 = vmatpush.msrb.mxu2 %v3018_v29 }
0x1464   :  { %2110 = vmatpush.msrb.mxu1 %v2993_v16  ;;  %2166 = vmatpush.msrb.mxu3 %v2985_v11 }
0x1465   :  { %1728 = vmatmul.f32.vlgmr.msrb.gmra.mxu0 %v1727_v38  ;;  %1884 = vmatmul.f32.vlgmr.msra.gmra.mxu1 %v1723_v49 }
0x1466   :  { %2075 = vmatpush.msrb.mxu0 %v2997_v19  ;;  %2168 = vmatpush.msrb.mxu3 %v2987_v12 }
0x1467   :  { %2141 = vmatpush.msrb.mxu2 %v3021_v30  ;;  %2325 = vmatpush.msra.mxu1 %v3036_v42 }
0x1468   :  { %2078 = vmatpush.msrb.mxu0 %v3000_v20  ;;  %2170 = vmatpush.msrb.mxu3 %v2993_v16 }
0x1469   :  { %2145 = vmatpush.msrb.mxu2 %v3025_v33  ;;  %2331 = vmatpush.msra.mxu1 %v3038_v44 }
0x146a   :  { %2081 = vmatpush.msrb.mxu0 %v3003_v21 }
0x146b   :  { %2337 = vmatpush.msra.mxu1 %v3042_v46 }
0x146c   :  { %2084 = vmatpush.msrb.mxu0 %v3010_v25 }
0x146d   :  { %1859 = vmatmul.f32.vlgmr.msra.gmra.mxu0 %v1723_v49  ;;  %2343 = vmatpush.msra.mxu1 %v3047_v48 }
0x146e   :  { %2292 = vmatpush.msra.mxu0 %v2983_v10 }
0x1470   :  { %2294 = vmatpush.msra.mxu0 %v2985_v11 }
0x1472   :  { %2296 = vmatpush.msra.mxu0 %v2987_v12 }
0x1474   :  { %2298 = vmatpush.msra.mxu0 %v2993_v16 }
0x14da   :  { %v1770_v42 = vpop.f32.mrf.mxu1 }
0x14e2   :  { %v1729_v36 = vpop.f32.mrf.mxu0  ;;  %v1800_v18 = vpop.f32.mrf.mxu2 }
0x14e3   :  { %v1771_v44 = vadd.f32 %v1770_v42, %v1729_v36  ;;  %v1885_v15 = vpop.f32.mrf.mxu1 }
0x14e4   :  { %v1827_v37 = vpop.f32.mrf.mxu3 }
0x14e5   :  { %v1801_v47 = vadd.f32 %v1800_v18, %v1771_v44 }
0x14e7   :  { %v1828_v46 = vadd.f32 %v1827_v37, %v1801_v47 }
0x14ea   :  { %v1860_v41 = vpop.f32.mrf.mxu0 }
0x14eb   :  { %v1861_v35 = vadd.f32 %v1860_v41, %v1828_v46 }
0x14ed   :  { %v1886_v51 = vadd.f32 %v1885_v15, %v1861_v35 }
0x14ef   :  { %v1889_v48 = vrot.slane %v1886_v51, 3 }
0x14f1   :  { %v1891_v52 = vadd.f32 %v1889_v48, %v3107_v9 }
0x14f3   :  { %v2632_v53 = vmul.f32 -1.442695, %v1891_v52 }
0x14f5   :  { %2730 = vpow2.f32 %v2632_v53 }
0x14fb   :  { %v2731_v54 = vpop.eup %2730 }
0x14fc   :  { %v1895_v55 = vadd.f32 1.0, %v2731_v54 }
0x14fe   :  { %2732 = vrcp.f32 %v1895_v55  ;;  %v1907_v59 = vand.u32 2147483648, %v1895_v55  ;;  %v1905_v61 = vand.u32 2147483647, %v1895_v55  ;;  %vm1901_vm0 = vweird.f32 %v1895_v55 }
0x1500   :  { %v1908_v63 = vor.u32 1.1754944e-38, %v1907_v59  ;;  %vm1906_vm3 = vcmp.eq.f32.partialorder %v1905_v61, 8.507059e+37 }
0x1504   :  { %v2733_v56 = vpop.eup %2732 }
0x1505   :  { %v1897_v57 = vmul.f32 %v2733_v56, %v1895_v55  ;;  %vm1902_vm15 = vweird.f32 %v2733_v56 }
0x1506   :  { %vm1903_vm2 = vmor %vm1901_vm0, %vm1902_vm15 }
0x1507   :  { %v1898_v58 = vsub.f32 1.0, %v1897_v57 }
0x1509   :  { %v1899_v60 = vmul.f32 %v2733_v56, %v1898_v58 }
0x150b   :  { %v1900_v62 = vadd.f32 %v2733_v56, %v1899_v60 }
0x150d   :  { %v1904_v0 = vsel %vm1903_vm2, %v2733_v56, %v1900_v62 }
0x150e   :  { %v3339_v2 = vsel %vm1906_vm3, %v1908_v63, %v1904_v0 }
0x150f   :  { %v1914_v3 = vmul.f32 %v1912_v1, %v3339_v2 }
0x1511   :  { %v1916_v4 = vrot.slane %v1914_v3, 5 }
0x1513   :  { %1917 = vrot.lane.b32.xlu1 %v1916_v4, %s2921_s5 }
0x1585   :  { %v1918_v5 = vpop.permute.xlu1 %1917 }
0x1586   :  { %v1920_v6 = vsel %vm481_vm6, %v1918_v5, 0.0 }
0x1587   :  { %1921 = vadd.xlane.f32.xlu0 %v1920_v6 }
0x15fa   :  { %v1922_v7 = vpop.xlane.xlu0 %1921 }
0x15fb   :  { %v1923_v8 = vrot.slane %v1922_v7, 4 }
0x15fd   :  { %v1924_v14 = vadd.f32 %v1923_v8, %v1922_v7 }
0x15ff   :  { %v1925_v17 = vrot.slane %v1924_v14, 2 }
0x1601   :  { %v1926_v23 = vadd.f32 %v1925_v17, %v1924_v14 }
0x1603   :  { %v1927_v24 = vrot.slane %v1926_v23, 1 }
0x1605   :  { %v1928_v40 = vadd.f32 %v1927_v24, %v1926_v23 }
0x1607   :  { %2655 = vpush %v1928_v40 }
0x1638   :  { %s2656_s11 = spop %2655 }
0x1639   :  { %v1930_v26 = vstv %s2656_s11 }
0x163a   :  { %v1931_v43 = vmul.f32 0.03125, %v1930_v26 }
0x163c   :  { %v1932_v45 = vsub.f32 %v1914_v3, %v1931_v43 }
0x163e   :  { %v1933_v22 = vmul.f32 %v1932_v45, %v1932_v45 }
0x1640   :  { %v1935_v34 = vrot.slane %v1933_v22, 5 }
0x1642   :  { %1936 = vrot.lane.b32.xlu2 %v1935_v34, %s2921_s5 }
0x169c   :  { %v1937_v31 = vpop.permute.xlu2 %1936 }
0x169d   :  { %v1939_v49 = vsel %vm481_vm6, %v1937_v31, 0.0 }
0x169e   :  { %1940 = vadd.xlane.f32.xlu1 %v1939_v49 }
0x1711   :  { %v1941_v50 = vpop.xlane.xlu1 %1940 }
0x1712   :  { %v1942_v39 = vrot.slane %v1941_v50, 4 }
0x1714   :  { %v1943_v13 = vadd.f32 %v1942_v39, %v1941_v50 }
0x1716   :  { %v1944_v38 = vrot.slane %v1943_v13, 2 }
0x1718   :  { %v1945_v42 = vadd.f32 %v1944_v38, %v1943_v13 }
0x171a   :  { %v1946_v36 = vrot.slane %v1945_v42, 1 }
0x171c   :  { %v1947_v44 = vadd.f32 %v1946_v36, %v1945_v42 }
0x171e   :  { %2657 = vpush %v1947_v44 }
0x174f   :  { %s2658_s12 = spop %2657 }
0x1750   :  { %v1949_v18 = vstv %s2658_s12 }
0x1751   :  { %v1950_v47 = vmul.f32 0.032258064, %v1949_v18 }
0x1753   :  { %2734 = vrsqrt.f32 %v1950_v47  ;;  %vm1958_vm4 = vcmp.eq.f32.partialorder %v1950_v47, inf  ;;  %v1961_v52 = vand.u32 2147483648, %v1950_v47  ;;  %vm1960_vm5 = vcmp.eq.f32.partialorder %v1950_v47, 0.0 }
0x1759   :  { %v2735_v37 = vpop.eup %2734 }
0x175a   :  { %v1952_v46 = vmul.f32 %v2735_v37, %v1950_v47 }
0x175c   :  { %v1953_v41 = vmul.f32 %v2735_v37, %v1952_v46 }
0x175e   :  { %v1954_v35 = vmul.f32 0.5, %v1953_v41 }
0x1760   :  { %v1955_v15 = vsub.f32 1.5, %v1954_v35 }
0x1762   :  { %v1956_v51 = vmul.f32 %v2735_v37, %v1955_v15 }
0x1764   :  { %v1957_v48 = vmul.f32 %v1956_v51, %v1950_v47 }
0x1766   :  { %v1959_v53 = vsel %vm1958_vm4, %v1950_v47, %v1957_v48 }
0x1767   :  { %v1962_v54 = vsel %vm1960_vm5, %v1961_v52, %v1959_v53 }
0x1768   :  { %v1963_v55 = vadd.f32 1e-05, %v1962_v54 }
0x176a   :  { %2736 = vrcp.f32 %v1963_v55  ;;  %v1975_v59 = vand.u32 2147483648, %v1963_v55  ;;  %v1973_v61 = vand.u32 2147483647, %v1963_v55  ;;  %vm1969_vm8 = vweird.f32 %v1963_v55 }
0x176c   :  { %v1976_v63 = vor.u32 1.1754944e-38, %v1975_v59  ;;  %vm1974_vm10 = vcmp.eq.f32.partialorder %v1973_v61, 8.507059e+37 }
0x1770   :  { %v2737_v56 = vpop.eup %2736 }
0x1771   :  { %v1965_v57 = vmul.f32 %v2737_v56, %v1963_v55  ;;  %vm1970_vm7 = vweird.f32 %v2737_v56 }
0x1772   :  { %vm1971_vm9 = vmor %vm1969_vm8, %vm1970_vm7  ;;  %vm2571_vm8 = vcmask 1045504  }
0x1773   :  { %v1966_v58 = vsub.f32 1.0, %v1965_v57 }
0x1775   :  { %v1967_v60 = vmul.f32 %v2737_v56, %v1966_v58 }
0x1777   :  { %v1968_v62 = vadd.f32 %v2737_v56, %v1967_v60 }
0x1779   :  { %v1972_v0 = vsel %vm1971_vm9, %v2737_v56, %v1968_v62 }
0x177a   :  { %v1977_v1 = vsel %vm1974_vm10, %v1976_v63, %v1972_v0 }
0x177b   :  { %v3346_v3 = vmul.f32 %v1977_v1, %v1932_v45 }
0x177d   :  { %2738 = vtanh.f32 %v3346_v3  ;;  %v3351_v4 = vsel %vm2569_vm11, %v3304_v27, %v3346_v3  ;;  %v2200_v44 = vrot.slane %v3346_v3, 7 }
0x1783   :  { %v2739_v5 = vpop.eup %2738 }
0x1784   :  { %1981 = vrot.lane.b32.xlu2 %v2739_v5, %s2920_s2 }
0x17de   :  { %v1982_v6 = vpop.permute.xlu2 %1981 }
0x17df   :  { %v1984_v7 = vmul.f32 %v1982_v6, %v3339_v2 }
0x17e1   :  { %v1986_v8 = vrot.slane %v1984_v7, 5  ;;  %v3356_v14 = vsel %vm2569_vm11, %v3309_v32, %v1984_v7 }
0x17e3   :  { %1987 = vrot.lane.b32.xlu2 %v1986_v8, %s2922_s25 }
0x183d   :  { %v1988_v17 = vpop.permute.xlu2 %1987 }
0x183e   :  { %v1989_v23 = vsel %vm262_vm1, %v1988_v17, 0 }
0x183f   :  { %v2011_v24 = vand.u32 4294901760, %v1989_v23 }
0x1841   :  { %v2012_v40 = vsub.f32 %v1989_v23, %v2011_v24  ;;  %2057 = vmatmul.f32.vlgmr.msra.gmra.mxu3 %v2011_v24 }
0x1842   :  { %2392 = vmatpush.msra.mxu3 %v2983_v10 }
0x1843   :  { %v2013_v27 = vand.u32 4294901760, %v2012_v40  ;;  %2087 = vmatmul.f32.vlgmr.msrb.gmra.mxu0 %v2012_v40 }
0x1844   :  { %2394 = vmatpush.msra.mxu3 %v2985_v11  ;;  %2421 = vmatpush.msrb.mxu0 %v3015_v28 }
0x1845   :  { %v2014_v2 = vsub.f32 %v2012_v40, %v2013_v27  ;;  %2114 = vmatmul.f32.vlgmr.msrb.gmra.mxu1 %v2013_v27 }
0x1846   :  { %2396 = vmatpush.msra.mxu3 %v2987_v12  ;;  %2452 = vmatpush.msrb.mxu1 %v2983_v10 }
0x1847   :  { %v2015_v32 = vand.u32 4294901760, %v2014_v2  ;;  %2425 = vmatpush.msrb.mxu0 %v3018_v29 }
0x1848   :  { %2398 = vmatpush.msra.mxu3 %v2993_v16  ;;  %2454 = vmatpush.msrb.mxu1 %v2985_v11 }
0x1849   :  { %2016 = vmatmul.f32.vlgmr.msra.gmra.mxu2 %v2015_v32  ;;  %2172 = vmatmul.f32.vlgmr.msrb.gmra.mxu3 %v2011_v24 }
0x184a   :  { %2363 = vmatpush.msra.mxu2 %v2997_v19  ;;  %2456 = vmatpush.msrb.mxu1 %v2987_v12 }
0x184b   :  { %2429 = vmatpush.msrb.mxu0 %v3021_v30 }
0x184c   :  { %2366 = vmatpush.msra.mxu2 %v3000_v20  ;;  %2458 = vmatpush.msrb.mxu1 %v2993_v16 }
0x184d   :  { %2433 = vmatpush.msrb.mxu0 %v3025_v33 }
0x184e   :  { %2369 = vmatpush.msra.mxu2 %v3003_v21 }
0x1850   :  { %2372 = vmatpush.msra.mxu2 %v3010_v25 }
0x1851   :  { %2147 = vmatmul.f32.vlgmr.msrb.gmra.mxu2 %v2011_v24 }
0x18c0   :  { %v2088_v29 = vpop.f32.mrf.mxu0 }
0x18c2   :  { %v2115_v26 = vpop.f32.mrf.mxu1 }
0x18c4   :  { %v2058_v10 = vpop.f32.mrf.mxu3 }
0x18cc   :  { %v2017_v11 = vpop.f32.mrf.mxu2  ;;  %v2173_v45 = vpop.f32.mrf.mxu3 }
0x18cd   :  { %v2059_v28 = vadd.f32 %v2058_v10, %v2017_v11 }
0x18cf   :  { %v2089_v19 = vadd.f32 %v2088_v29, %v2059_v28 }
0x18d1   :  { %v2116_v12 = vadd.f32 %v2115_v26, %v2089_v19 }
0x18d4   :  { %v2148_v43 = vpop.f32.mrf.mxu2 }
0x18d5   :  { %v2149_v30 = vadd.f32 %v2148_v43, %v2116_v12 }
0x18d7   :  { %v2174_v20 = vadd.f32 %v2173_v45, %v2149_v30 }
0x18d9   :  { %v2177_v22 = vrot.slane %v2174_v20, 2 }
0x18db   :  { %v2179_v16 = vadd.f32 %v2177_v22, %v3107_v9 }
0x18dd   :  { %v2633_v33 = vmul.f32 -1.442695, %v2179_v16 }
0x18df   :  { %2740 = vpow2.f32 %v2633_v33 }
0x18e5   :  { %v2741_v21 = vpop.eup %2740 }
0x18e6   :  { %v2183_v34 = vadd.f32 1.0, %v2741_v21 }
0x18e8   :  { %2742 = vrcp.f32 %v2183_v34  ;;  %v2195_v50 = vand.u32 2147483648, %v2183_v34  ;;  %v2193_v13 = vand.u32 2147483647, %v2183_v34  ;;  %vm2189_vm13 = vweird.f32 %v2183_v34 }
0x18ea   :  { %v2196_v42 = vor.u32 1.1754944e-38, %v2195_v50  ;;  %vm2194_vm15 = vcmp.eq.f32.partialorder %v2193_v13, 8.507059e+37 }
0x18ee   :  { %v2743_v25 = vpop.eup %2742 }
0x18ef   :  { %v2185_v31 = vmul.f32 %v2743_v25, %v2183_v34  ;;  %vm2190_vm12 = vweird.f32 %v2743_v25 }
0x18f0   :  { %vm2191_vm14 = vmor %vm2189_vm13, %vm2190_vm12 }
0x18f1   :  { %v2186_v49 = vsub.f32 1.0, %v2185_v31 }
0x18f3   :  { %v2187_v39 = vmul.f32 %v2743_v25, %v2186_v49 }
0x18f5   :  { %v2188_v38 = vadd.f32 %v2743_v25, %v2187_v39 }
0x18f7   :  { %v2192_v36 = vsel %vm2191_vm14, %v2743_v25, %v2188_v38 }
0x18f8   :  { %v3378_v18 = vsel %vm2194_vm15, %v2196_v42, %v2192_v36 }
0x18f9   :  { %v2202_v47 = vmul.f32 %v2200_v44, %v3378_v18 }
0x18fb   :  { %v2204_v37 = vrot.slane %v2202_v47, 6 }
0x18fd   :  { %2205 = vrot.lane.b32.xlu0 %v2204_v37, %s2921_s5 }
0x196f   :  { %v2206_v46 = vpop.permute.xlu0 %2205 }
0x1970   :  { %v2208_v41 = vsel %vm481_vm6, %v2206_v46, 0.0 }
0x1971   :  { %2209 = vadd.xlane.f32.xlu2 %v2208_v41 }
0x19e4   :  { %v2210_v35 = vpop.xlane.xlu2 %2209 }
0x19e5   :  { %v2211_v15 = vrot.slane %v2210_v35, 4 }
0x19e7   :  { %v2212_v51 = vadd.f32 %v2211_v15, %v2210_v35 }
0x19e9   :  { %v2213_v48 = vrot.slane %v2212_v51, 2 }
0x19eb   :  { %v2214_v52 = vadd.f32 %v2213_v48, %v2212_v51 }
0x19ed   :  { %v2215_v53 = vrot.slane %v2214_v52, 1 }
0x19ef   :  { %v2216_v54 = vadd.f32 %v2215_v53, %v2214_v52 }
0x19f1   :  { %2659 = vpush %v2216_v54 }
0x1a22   :  { %s2660_s13 = spop %2659 }
0x1a23   :  { %v2218_v55 = vstv %s2660_s13 }
0x1a24   :  { %v2219_v56 = vmul.f32 0.03125, %v2218_v55 }
0x1a26   :  { %v2220_v57 = vsub.f32 %v2202_v47, %v2219_v56 }
0x1a28   :  { %v2221_v58 = vmul.f32 %v2220_v57, %v2220_v57 }
0x1a2a   :  { %v2223_v59 = vrot.slane %v2221_v58, 6 }
0x1a2c   :  { %2224 = vrot.lane.b32.xlu1 %v2223_v59, %s2921_s5 }
0x1a9e   :  { %v2225_v60 = vpop.permute.xlu1 %2224 }
0x1a9f   :  { %v2227_v61 = vsel %vm481_vm6, %v2225_v60, 0.0 }
0x1aa0   :  { %2228 = vadd.xlane.f32.xlu0 %v2227_v61 }
0x1b13   :  { %v2229_v62 = vpop.xlane.xlu0 %2228 }
0x1b14   :  { %v2230_v63 = vrot.slane %v2229_v62, 4 }
0x1b16   :  { %v2231_v0 = vadd.f32 %v2230_v63, %v2229_v62 }
0x1b18   :  { %v2232_v1 = vrot.slane %v2231_v0, 2 }
0x1b1a   :  { %v2233_v3 = vadd.f32 %v2232_v1, %v2231_v0 }
0x1b1c   :  { %v2234_v5 = vrot.slane %v2233_v3, 1 }
0x1b1e   :  { %v2235_v6 = vadd.f32 %v2234_v5, %v2233_v3 }
0x1b20   :  { %2661 = vpush %v2235_v6 }
0x1b51   :  { %s2662_s1 = spop %2661 }
0x1b52   :  { %v2237_v7 = vstv %s2662_s1 }
0x1b53   :  { %v2238_v8 = vmul.f32 0.032258064, %v2237_v7 }
0x1b55   :  { %2744 = vrsqrt.f32 %v2238_v8  ;;  %vm2246_vm0 = vcmp.eq.f32.partialorder %v2238_v8, inf  ;;  %v2249_v10 = vand.u32 2147483648, %v2238_v8  ;;  %vm2248_vm2 = vcmp.eq.f32.partialorder %v2238_v8, 0.0 }
0x1b5b   :  { %v2745_v17 = vpop.eup %2744 }
0x1b5c   :  { %v2240_v23 = vmul.f32 %v2745_v17, %v2238_v8 }
0x1b5e   :  { %v2241_v24 = vmul.f32 %v2745_v17, %v2240_v23 }
0x1b60   :  { %v2242_v40 = vmul.f32 0.5, %v2241_v24 }
0x1b62   :  { %v2243_v27 = vsub.f32 1.5, %v2242_v40 }
0x1b64   :  { %v2244_v2 = vmul.f32 %v2745_v17, %v2243_v27 }
0x1b66   :  { %v2245_v32 = vmul.f32 %v2244_v2, %v2238_v8 }
0x1b68   :  { %v2247_v11 = vsel %vm2246_vm0, %v2238_v8, %v2245_v32 }
0x1b69   :  { %v2250_v28 = vsel %vm2248_vm2, %v2249_v10, %v2247_v11 }
0x1b6a   :  { %v2251_v29 = vadd.f32 1e-05, %v2250_v28 }
0x1b6c   :  { %2746 = vrcp.f32 %v2251_v29  ;;  %v2263_v43 = vand.u32 2147483648, %v2251_v29  ;;  %v2261_v45 = vand.u32 2147483647, %v2251_v29  ;;  %vm2257_vm4 = vweird.f32 %v2251_v29 }
0x1b6e   :  { %v2264_v22 = vor.u32 1.1754944e-38, %v2263_v43  ;;  %vm2262_vm7 = vcmp.eq.f32.partialorder %v2261_v45, 8.507059e+37 }
0x1b72   :  { %v2747_v19 = vpop.eup %2746 }
0x1b73   :  { %v2253_v26 = vmul.f32 %v2747_v19, %v2251_v29  ;;  %vm2258_vm3 = vweird.f32 %v2747_v19 }
0x1b74   :  { %vm2259_vm5 = vmor %vm2257_vm4, %vm2258_vm3  ;;  %vm2573_vm3 = vcmask 1046528  }
0x1b75   :  { %v2254_v12 = vsub.f32 1.0, %v2253_v26 }
0x1b77   :  { %v2255_v30 = vmul.f32 %v2747_v19, %v2254_v12 }
0x1b79   :  { %v2256_v20 = vadd.f32 %v2747_v19, %v2255_v30 }
0x1b7b   :  { %v2260_v16 = vsel %vm2259_vm5, %v2747_v19, %v2256_v20 }
0x1b7c   :  { %v2265_v33 = vsel %vm2262_vm7, %v2264_v22, %v2260_v16 }
0x1b7d   :  { %v2266_v21 = vmul.f32 %v2265_v33, %v2220_v57 }
0x1b7f   :  { %2748 = vtanh.f32 %v2266_v21  ;;  %v3386_v34 = vsel %vm2571_vm8, %v3351_v4, %v2266_v21  ;;  %v2488_v6 = vrot.slane %v2266_v21, 7 }
0x1b85   :  { %v2749_v25 = vpop.eup %2748 }
0x1b86   :  { %2269 = vrot.lane.b32.xlu1 %v2749_v25, %s2920_s2 }
0x1bf8   :  { %v2270_v31 = vpop.permute.xlu1 %2269 }
0x1bf9   :  { %v2272_v49 = vmul.f32 %v2270_v31, %v3378_v18 }
0x1bfb   :  { %v2274_v50 = vrot.slane %v2272_v49, 6  ;;  %v3391_v39 = vsel %vm2571_vm8, %v3356_v14, %v2272_v49 }
0x1bfd   :  { %2275 = vrot.lane.b32.xlu2 %v2274_v50, %s2922_s25 }
0x1c57   :  { %v2276_v13 = vpop.permute.xlu2 %2275 }
0x1c58   :  { %v2277_v38 = vsel %vm262_vm1, %v2276_v13, 0 }
0x1c59   :  { %v2299_v42 = vand.u32 4294901760, %v2277_v38 }
0x1c5b   :  { %v2300_v36 = vsub.f32 %v2277_v38, %v2299_v42  ;;  %2345 = vmatmul.f32.vlgmr.msra.gmra.mxu1 %v2299_v42 }
0x1c5d   :  { %v2301_v4 = vand.u32 4294901760, %v2300_v36  ;;  %2375 = vmatmul.f32.vlgmr.msra.gmra.mxu2 %v2300_v36 }
0x1c5f   :  { %v2302_v44 = vsub.f32 %v2300_v36, %v2301_v4  ;;  %2402 = vmatmul.f32.vlgmr.msra.gmra.mxu3 %v2301_v4 }
0x1c61   :  { %v2303_v47 = vand.u32 4294901760, %v2302_v44 }
0x1c63   :  { %2304 = vmatmul.f32.vlgmr.msra.gmra.mxu0 %v2303_v47  ;;  %2460 = vmatmul.f32.vlgmr.msrb.gmra.mxu1 %v2299_v42 }
0x1c6b   :  { %2435 = vmatmul.f32.vlgmr.msrb.gmra.mxu0 %v2299_v42 }
0x1cd8   :  { %v2346_v18 = vpop.f32.mrf.mxu1 }
0x1ce0   :  { %v2305_v37 = vpop.f32.mrf.mxu0  ;;  %v2376_v46 = vpop.f32.mrf.mxu2 }
0x1ce1   :  { %v2347_v14 = vadd.f32 %v2346_v18, %v2305_v37  ;;  %v2461_v52 = vpop.f32.mrf.mxu1 }
0x1ce2   :  { %v2403_v35 = vpop.f32.mrf.mxu3 }
0x1ce3   :  { %v2377_v41 = vadd.f32 %v2376_v46, %v2347_v14 }
0x1ce5   :  { %v2404_v15 = vadd.f32 %v2403_v35, %v2377_v41 }
0x1ce8   :  { %v2436_v51 = vpop.f32.mrf.mxu0 }
0x1ce9   :  { %v2437_v48 = vadd.f32 %v2436_v51, %v2404_v15 }
0x1ceb   :  { %v2462_v53 = vadd.f32 %v2461_v52, %v2437_v48 }
0x1ced   :  { %v2465_v54 = vrot.slane %v2462_v53, 1 }
0x1cef   :  { %v2467_v55 = vadd.f32 %v2465_v54, %v3107_v9 }
0x1cf1   :  { %v2634_v56 = vmul.f32 -1.442695, %v2467_v55 }
0x1cf3   :  { %2750 = vpow2.f32 %v2634_v56 }
0x1cf9   :  { %v2751_v57 = vpop.eup %2750 }
0x1cfa   :  { %v2471_v58 = vadd.f32 1.0, %v2751_v57 }
0x1cfc   :  { %2752 = vrcp.f32 %v2471_v58  ;;  %v2483_v62 = vand.u32 2147483648, %v2471_v58  ;;  %v2481_v0 = vand.u32 2147483647, %v2471_v58  ;;  %vm2477_vm10 = vweird.f32 %v2471_v58 }
0x1cfe   :  { %v2484_v3 = vor.u32 1.1754944e-38, %v2483_v62  ;;  %vm2482_vm12 = vcmp.eq.f32.partialorder %v2481_v0, 8.507059e+37 }
0x1d02   :  { %v2753_v59 = vpop.eup %2752 }
0x1d03   :  { %v2473_v60 = vmul.f32 %v2753_v59, %v2471_v58  ;;  %vm2478_vm9 = vweird.f32 %v2753_v59 }
0x1d04   :  { %vm2479_vm11 = vmor %vm2477_vm10, %vm2478_vm9 }
0x1d05   :  { %v2474_v61 = vsub.f32 1.0, %v2473_v60 }
0x1d07   :  { %v2475_v63 = vmul.f32 %v2753_v59, %v2474_v61 }
0x1d09   :  { %v2476_v1 = vadd.f32 %v2753_v59, %v2475_v63 }
0x1d0b   :  { %v2480_v5 = vsel %vm2479_vm11, %v2753_v59, %v2476_v1 }
0x1d0c   :  { %v3396_v9 = vsel %vm2482_vm12, %v2484_v3, %v2480_v5 }
0x1d0d   :  { %v2490_v7 = vmul.f32 %v2488_v6, %v3396_v9 }
0x1d0f   :  { %v2492_v8 = vrot.slane %v2490_v7, 7 }
0x1d11   :  { %2493 = vrot.lane.b32.xlu1 %v2492_v8, %s2921_s5 }
0x1d83   :  { %v2494_v17 = vpop.permute.xlu1 %2493 }
0x1d84   :  { %v2496_v23 = vsel %vm481_vm6, %v2494_v17, 0.0 }
0x1d85   :  { %2497 = vadd.xlane.f32.xlu1 %v2496_v23 }
0x1df8   :  { %v2498_v24 = vpop.xlane.xlu1 %2497 }
0x1df9   :  { %v2499_v40 = vrot.slane %v2498_v24, 4 }
0x1dfb   :  { %v2500_v27 = vadd.f32 %v2499_v40, %v2498_v24 }
0x1dfd   :  { %v2501_v2 = vrot.slane %v2500_v27, 2 }
0x1dff   :  { %v2502_v32 = vadd.f32 %v2501_v2, %v2500_v27 }
0x1e01   :  { %v2503_v10 = vrot.slane %v2502_v32, 1 }
0x1e03   :  { %v2504_v11 = vadd.f32 %v2503_v10, %v2502_v32 }
0x1e05   :  { %2663 = vpush %v2504_v11 }
0x1e36   :  { %s2664_s14 = spop %2663 }
0x1e37   :  { %v2506_v28 = vstv %s2664_s14 }
0x1e38   :  { %v2507_v29 = vmul.f32 0.03125, %v2506_v28 }
0x1e3a   :  { %v2508_v19 = vsub.f32 %v2490_v7, %v2507_v29 }
0x1e3c   :  { %v2509_v26 = vmul.f32 %v2508_v19, %v2508_v19 }
0x1e3e   :  { %v2511_v12 = vrot.slane %v2509_v26, 7 }
0x1e40   :  { %2512 = vrot.lane.b32.xlu0 %v2511_v12, %s2921_s5 }
0x1eb2   :  { %v2513_v43 = vpop.permute.xlu0 %2512 }
0x1eb3   :  { %v2515_v30 = vsel %vm481_vm6, %v2513_v43, 0.0 }
0x1eb4   :  { %2516 = vadd.xlane.f32.xlu2 %v2515_v30 }
0x1f27   :  { %v2517_v45 = vpop.xlane.xlu2 %2516 }
0x1f28   :  { %v2518_v20 = vrot.slane %v2517_v45, 4 }
0x1f2a   :  { %v2519_v22 = vadd.f32 %v2518_v20, %v2517_v45 }
0x1f2c   :  { %v2520_v16 = vrot.slane %v2519_v22, 2 }
0x1f2e   :  { %v2521_v33 = vadd.f32 %v2520_v16, %v2519_v22 }
0x1f30   :  { %v2522_v21 = vrot.slane %v2521_v33, 1 }
0x1f32   :  { %v2523_v25 = vadd.f32 %v2522_v21, %v2521_v33 }
0x1f34   :  { %2665 = vpush %v2523_v25 }
0x1f65   :  { %s2666_s15 = spop %2665 }
0x1f66   :  { %v2525_v31 = vstv %s2666_s15 }
0x1f67   :  { %v2526_v49 = vmul.f32 0.032258064, %v2525_v31 }
0x1f69   :  { %2754 = vrsqrt.f32 %v2526_v49  ;;  %vm2534_vm6 = vcmp.eq.f32.partialorder %v2526_v49, inf  ;;  %v2537_v47 = vand.u32 2147483648, %v2526_v49  ;;  %vm2536_vm13 = vcmp.eq.f32.partialorder %v2526_v49, 0.0 }
0x1f6f   :  { %v2755_v50 = vpop.eup %2754 }
0x1f70   :  { %v2528_v13 = vmul.f32 %v2755_v50, %v2526_v49 }
0x1f72   :  { %v2529_v38 = vmul.f32 %v2755_v50, %v2528_v13 }
0x1f74   :  { %v2530_v42 = vmul.f32 0.5, %v2529_v38 }
0x1f76   :  { %v2531_v36 = vsub.f32 1.5, %v2530_v42 }
0x1f78   :  { %v2532_v4 = vmul.f32 %v2755_v50, %v2531_v36 }
0x1f7a   :  { %v2533_v44 = vmul.f32 %v2532_v4, %v2526_v49 }
0x1f7c   :  { %v2535_v18 = vsel %vm2534_vm6, %v2526_v49, %v2533_v44 }
0x1f7d   :  { %v2538_v37 = vsel %vm2536_vm13, %v2537_v47, %v2535_v18 }
0x1f7e   :  { %v2539_v14 = vadd.f32 1e-05, %v2538_v37 }
0x1f80   :  { %2756 = vrcp.f32 %v2539_v14  ;;  %v2551_v15 = vand.u32 2147483648, %v2539_v14  ;;  %v2549_v48 = vand.u32 2147483647, %v2539_v14  ;;  %vm2545_vm15 = vweird.f32 %v2539_v14 }
0x1f82   :  { %v2552_v53 = vor.u32 1.1754944e-38, %v2551_v15  ;;  %vm2550_vm2 = vcmp.eq.f32.partialorder %v2549_v48, 8.507059e+37 }
0x1f86   :  { %v2757_v46 = vpop.eup %2756 }
0x1f87   :  { %v2541_v41 = vmul.f32 %v2757_v46, %v2539_v14  ;;  %vm2546_vm14 = vweird.f32 %v2757_v46 }
0x1f88   :  { %vm2547_vm0 = vmor %vm2545_vm15, %vm2546_vm14 }
0x1f89   :  { %v2542_v35 = vsub.f32 1.0, %v2541_v41 }
0x1f8b   :  { %v2543_v51 = vmul.f32 %v2757_v46, %v2542_v35 }
0x1f8d   :  { %v2544_v52 = vadd.f32 %v2757_v46, %v2543_v51 }
0x1f8f   :  { %v2548_v54 = vsel %vm2547_vm0, %v2757_v46, %v2544_v52 }
0x1f90   :  { %v2553_v55 = vsel %vm2550_vm2, %v2552_v53, %v2548_v54 }
0x1f91   :  { %v2554_v56 = vmul.f32 %v2553_v55, %v2508_v19 }
0x1f93   :  { %2758 = vtanh.f32 %v2554_v56  ;;  %v2586_v57 = vsel %vm2573_vm3, %v3386_v34, %v2554_v56 }
0x1f99   :  { %v2759_v58 = vpop.eup %2758 }
0x1f9a   :  { %2557 = vrot.lane.b32.xlu0 %v2759_v58, %s2920_s2 }
0x200c   :  { %v2558_v59 = vpop.permute.xlu0 %2557 }
0x200d   :  { %v2560_v60 = vmul.f32 %v2558_v59, %v3396_v9 }
0x200f   :  { %v2574_v61 = vsel %vm2573_vm3, %v3391_v39, %v2560_v60 }
0x2010   :  { %2576 = vrot.lane.b32.xlu0 %v2574_v61, %s2922_s25 }
0x2018   :  { %2588 = vrot.lane.b32.xlu0 %v2586_v57, %s2921_s5 }
0x2082   :  { %v2577_v34 = vpop.permute.xlu0 %2576 }
0x2083   :  { %2579 = vst.msk [vmem:[#allocation10] sm:$0xff] %vm262_vm1, %v2577_v34 }
0x2084   :  { %2602 = dma.vmem_to_hbm [thread:$0]  %s2598_s17, 128, %s2600_s19, [#allocation4]  }
0x208a   :  { %v2589_v39 = vpop.permute.xlu0 %2588 }
0x208b   :  { %2591 = vst.msk [vmem:[#allocation11] sm:$0xff] %vm262_vm1, %v2589_v39 }
0x208c   :  { %2613 = dma.vmem_to_hbm [thread:$0]  %s2609_s3, 128, %s2611_s21, [#allocation12]  }
0x208d   :  { %2910 = dma.done.wait [#allocation4], 128  }
0x208e   :  { %2911 = vsyncadd [#allocation4], 4294967168 }
0x208f   :  { %2912 = dma.done.wait [#allocation12], 128  }
0x2090   :  { %2913 = vsyncadd [#allocation12], 4294967168 }
0x2091   :  { %2622 = vsyncpa [#allocation3], 1 }
0x2092   :  { %2623 = vsyncpa [#allocation6], 1 }
0x2093   :  { %2624 = vsyncpa [#allocation9], 1 }
0x2094   :  { %2625 = vsyncpa [#allocation4], 1 }
0x2095   :  { %2626 = vsyncpa [#allocation12], 1 }

</bundles_post_ra>
